<compile_context>
chip_gen: v5e
topology: v5e:2x2
jax: 0.10.0
libtpu: 0.0.40
codegen_flags: <defaults>
</compile_context>

<pallas_src>
import jax
import jax.numpy as jnp
from jax import lax
from jax.experimental import pallas as pl
from jax.experimental.pallas import tpu as pltpu


def _round_up(x, m):
    return (x + m - 1) // m * m


def asym_bi_cha_fuse_reduce(xh, xl, params):
    """xh: (N, Ch_high, H, W), xl: (N, C_out, H, W) -> (N, C_out, H, W)."""
    N, Ch, H, W = xh.shape
    _, C, _, _ = xl.shape
    HW = H * W
    NHW = N * HW
    CB = params['w_td1'].shape[1]           # bottleneck channels

    f32 = jnp.float32
    bf16 = jnp.bfloat16

    # C multiple of 8 keeps the wei[:C]/wei[C:] sublane split tile-aligned.
    assert C % 8 == 0, "out_channels must be a multiple of 8"

    # ---- pack all weights (BN scale folded in) into one bf16 slab --------
    # Row offsets aligned to 16 (bf16 sublane-tile height) for clean slices.
    off_fh = 0
    off_g1 = _round_up(off_fh + C, 16)
    off_g2 = _round_up(off_g1 + 2 * CB, 16)
    off_post = _round_up(off_g2 + 2 * C, 16)
    slab_rows = _round_up(off_post + C, 16)
    slab_cols = max(Ch, 2 * C, 2 * CB, 9 * C)

    w_slab = jnp.zeros((slab_rows, slab_cols), f32)
    # feature_high: (C, Ch), scale folded into rows.
    w_slab = w_slab.at[off_fh:off_fh + C, :Ch].set(
        params['s_fh'][:, None] * params['w_fh'].T)
    # gate layer 1, block-diagonal (2CB, 2C): [td1 | 0 ; 0 | bu1].
    g1 = jnp.zeros((2 * CB, 2 * C), f32)
    g1 = g1.at[:CB, :C].set(params['s_td1'][:, None] * params['w_td1'].T)
    g1 = g1.at[CB:, C:].set(params['s_bu1'][:, None] * params['w_bu1'].T)
    w_slab = w_slab.at[off_g1:off_g1 + 2 * CB, :2 * C].set(g1)
    # gate layer 2, block-diagonal (2C, 2CB).
    g2 = jnp.zeros((2 * C, 2 * CB), f32)
    g2 = g2.at[:C, :CB].set(params['s_td2'][:, None] * params['w_td2'].T)
    g2 = g2.at[C:, CB:].set(params['s_bu2'][:, None] * params['w_bu2'].T)
    w_slab = w_slab.at[off_g2:off_g2 + 2 * C, :2 * CB].set(g2)
    # post 3x3 conv as im2col weight (C, 9*C), entry [co, k*C + ci].
    wp = params['s_post'][:, None] * params['w_post_hwio'].reshape(9 * C, C).T
    w_slab = w_slab.at[off_post:off_post + C, :9 * C].set(wp)
    w_slab = w_slab.astype(bf16)

    # ---- per-channel shifts (BN beta + folded conv bias) in one f32 slab --
    b_slab = jnp.zeros((slab_rows, 1), f32)
    b_slab = b_slab.at[off_fh:off_fh + C, 0].set(params['b_fh'])
    b_slab = b_slab.at[off_g1:off_g1 + 2 * CB, 0].set(
        jnp.concatenate([params['b_td1'], params['b_bu1']]))
    b_slab = b_slab.at[off_g2:off_g2 + 2 * C, 0].set(
        jnp.concatenate([params['b_td2'], params['b_bu2']]))
    b_slab = b_slab.at[off_post:off_post + C, 0].set(params['b_post'])

    # ---- host-precomputed 3x3 SAME validity mask, tiled over the batch ----
    # mask9[0, k*NHW + n*HW + p] = 1 iff tap k of pixel p stays inside the
    # image.  Cross-image leakage from lane rolls is impossible for valid
    # taps (the shifted local index stays in [0, HW)), so the per-image mask
    # is sufficient even with the batch folded into lanes.
    p_loc = jnp.arange(HW)
    row = p_loc // W
    colm = p_loc % W
    masks = []
    for k in range(9):
        dy, dx = k // 3 - 1, k % 3 - 1
        valid = ((row + dy >= 0) & (row + dy < H)
                 & (colm + dx >= 0) & (colm + dx < W))
        masks.append(jnp.tile(valid.astype(f32), N))          # (NHW,)
    mask9 = jnp.concatenate(masks).reshape(1, 9 * NHW)

    # ---- segment matrices for the per-image GAP (pad N up to 8 lanes) -----
    NP = max(_round_up(N, 8), 8)
    img_id = jnp.repeat(jnp.arange(N), HW)                     # (NHW,)
    onehot = (img_id[:, None] == jnp.arange(NP)[None, :]).astype(f32)
    seg_avg = (onehot / HW).astype(bf16)                       # (NHW, NP)
    seg_bc = onehot.T.astype(bf16)                             # (NP, NHW)

    # ---- kernel ------------------------------------------------------------
    def kernel(xh_ref, xl_ref, w_ref, b_ref, mask_ref, sa_ref, sb_ref,
               out_ref, patch_ref):
        xh_m = xh_ref[...]                                     # (Ch, NHW) f32
        xl_m = xl_ref[...]                                     # (C, NHW) f32

        def mm(w_bf, x_bf, shift):
            y = jnp.dot(w_bf, x_bf, preferred_element_type=jnp.float32)
            return y + shift

        # feature_high: 1x1 conv (BN scale folded) + shift + ReLU.
        xh_f = jnp.maximum(
            mm(w_ref[off_fh:off_fh + C, :Ch], xh_m.astype(bf16),
               b_ref[off_fh:off_fh + C, :]), 0.0)              # (C, NHW)

        # Per-image global average pool + broadcast back, as two tiny MXU
        # matmuls against constant segment matrices (no lane reshape).
        gap_small = jnp.dot(xh_f.astype(bf16), sa_ref[...],
                            preferred_element_type=jnp.float32)   # (C, NP)
        gap_bc = jnp.dot(gap_small.astype(bf16), sb_ref[...],
                         preferred_element_type=jnp.float32)      # (C, NHW)

        # topdown + bottomup gates packed block-diagonally.
        g_in = jnp.concatenate([gap_bc, xl_m], axis=0).astype(bf16)  # (2C, NHW)
        h1 = jnp.maximum(
            mm(w_ref[off_g1:off_g1 + 2 * CB, :2 * C], g_in,
               b_ref[off_g1:off_g1 + 2 * CB, :]), 0.0)         # (2CB, NHW)
        wei = jax.nn.sigmoid(
            mm(w_ref[off_g2:off_g2 + 2 * C, :2 * CB], h1.astype(bf16),
               b_ref[off_g2:off_g2 + 2 * C, :]))               # (2C, NHW)
        topdown_wei = wei[:C]
        bottomup_wei = wei[C:]

        # xs = 2 * xl * topdown_wei + 2 * xh * bottomup_wei
        fused = 2.0 * xl_m * topdown_wei + 2.0 * xh_f * bottomup_wei  # (C,NHW)

        # post: 3x3 SAME conv as ONE im2col matmul.  Spatial shifts are lane
        # rolls; zero padding via the host-precomputed mask.  Masking stays in
        # f32 (v5e has no bf16 VALU); each tap is cast to bf16 and stored into
        # the VMEM scratch at a static, tile-aligned sublane offset.
        for k in range(9):
            dy, dx = k // 3 - 1, k % 3 - 1
            delta = dy * W + dx
            if delta == 0:
                patch = fused
            else:
                patch = pltpu.roll(fused, shift=(-delta) % NHW, axis=1)
                patch = patch * mask_ref[:, k * NHW:(k + 1) * NHW]
            patch_ref[k * C:(k + 1) * C, :] = patch.astype(bf16)

        y = jnp.dot(w_ref[off_post:off_post + C, :9 * C], patch_ref[...],
                    preferred_element_type=jnp.float32)
        y = jnp.maximum(y + b_ref[off_post:off_post + C, :], 0.0)
        out_ref[...] = y.astype(out_ref.dtype)

    # ---- pallas_call: single grid step, 7 operands, 1 VMEM scratch --------
    xh2 = xh.transpose(1, 0, 2, 3).reshape(Ch, NHW)
    xl2 = xl.transpose(1, 0, 2, 3).reshape(C, NHW)
    args = [xh2, xl2, w_slab, b_slab, mask9, seg_avg, seg_bc]

    def full_block(shape):
        nd = len(shape)
        return pl.BlockSpec(shape, lambda n, _nd=nd: (0,) * _nd)

    out2 = pl.pallas_call(
        kernel,
        out_shape=jax.ShapeDtypeStruct((C, NHW), jnp.float32),
        grid_spec=pltpu.PrefetchScalarGridSpec(
            num_scalar_prefetch=0,
            grid=(1,),
            in_specs=[full_block(a.shape) for a in args],
            out_specs=full_block((C, NHW)),
            scratch_shapes=[pltpu.VMEM((9 * C, NHW), bf16)]),
        compiler_params=pltpu.CompilerParams(
            dimension_semantics=("arbitrary",),
            vmem_limit_bytes=32 * 1024 * 1024),
    )(*args)

    return out2.reshape(C, N, H, W).transpose(1, 0, 2, 3)


def make_params(key, ch_high, c_out, cb):
    """Deterministic synthetic params; BN (eval mode) + conv bias expressed as
    per-channel scale/shift.  Weights kept in canonical (Cin, Cout) form."""
    eps = 1e-5

    def conv_bn_params(k, cin, cout, scale):
        k1, k2, k3, k4, k5, k6 = jax.random.split(k, 6)
        w = jax.random.normal(k1, (cin, cout), jnp.float32) * scale
        bias = jax.random.normal(k2, (cout,), jnp.float32) * 0.1
        gamma = 1.0 + 0.1 * jax.random.normal(k3, (cout,), jnp.float32)
        beta = 0.1 * jax.random.normal(k4, (cout,), jnp.float32)
        mean = 0.1 * jax.random.normal(k5, (cout,), jnp.float32)
        var = jnp.abs(jax.random.normal(k6, (cout,), jnp.float32)) + 0.5
        s = gamma / jnp.sqrt(var + eps)
        b = beta + (bias - mean) * s
        return w, s, b

    keys = jax.random.split(key, 6)
    p = {}
    p['w_fh'], p['s_fh'], p['b_fh'] = conv_bn_params(keys[0], ch_high, c_out, 0.2)
    p['w_td1'], p['s_td1'], p['b_td1'] = conv_bn_params(keys[1], c_out, cb, 0.2)
    p['w_td2'], p['s_td2'], p['b_td2'] = conv_bn_params(keys[2], cb, c_out, 0.2)
    p['w_bu1'], p['s_bu1'], p['b_bu1'] = conv_bn_params(keys[3], c_out, cb, 0.2)
    p['w_bu2'], p['s_bu2'], p['b_bu2'] = conv_bn_params(keys[4], cb, c_out, 0.2)

    k1, k2, k3, k4, k5, k6 = jax.random.split(keys[5], 6)
    w_post_hwio = jax.random.normal(k1, (3, 3, c_out, c_out), jnp.float32) * 0.1
    bias = jax.random.normal(k2, (c_out,), jnp.float32) * 0.1
    gamma = 1.0 + 0.1 * jax.random.normal(k3, (c_out,), jnp.float32)
    beta = 0.1 * jax.random.normal(k4, (c_out,), jnp.float32)
    mean = 0.1 * jax.random.normal(k5, (c_out,), jnp.float32)
    var = jnp.abs(jax.random.normal(k6, (c_out,), jnp.float32)) + 0.5
    s = gamma / jnp.sqrt(var + eps)
    p['w_post_hwio'] = w_post_hwio
    p['s_post'] = s
    p['b_post'] = beta + (bias - mean) * s
    return p


def reference(xh, xl, p):
    """Pure-JAX f32 (HIGHEST precision) reference of AsymBiChaFuseReduce (NCHW)."""
    prec = jax.lax.Precision.HIGHEST

    def conv1x1_bn(x, w, s, b):
        y = jnp.einsum('nchw,cd->ndhw', x, w, precision=prec)
        return y * s.reshape(1, -1, 1, 1) + b.reshape(1, -1, 1, 1)

    xh_f = jax.nn.relu(conv1x1_bn(xh, p['w_fh'], p['s_fh'], p['b_fh']))
    gap = jnp.mean(xh_f, axis=(2, 3), keepdims=True)
    topdown_wei = jax.nn.sigmoid(conv1x1_bn(
        jax.nn.relu(conv1x1_bn(gap, p['w_td1'], p['s_td1'], p['b_td1'])),
        p['w_td2'], p['s_td2'], p['b_td2']))
    bottomup_wei = jax.nn.sigmoid(conv1x1_bn(
        jax.nn.relu(conv1x1_bn(xl, p['w_bu1'], p['s_bu1'], p['b_bu1'])),
        p['w_bu2'], p['s_bu2'], p['b_bu2']))
    fused = 2.0 * xl * topdown_wei + 2.0 * xh_f * bottomup_wei
    y = lax.conv_general_dilated(fused, p['w_post_hwio'], (1, 1), 'SAME',
                                 dimension_numbers=('NCHW', 'HWIO', 'NCHW'),
                                 precision=prec)
    return jax.nn.relu(y * p['s_post'].reshape(1, -1, 1, 1)
                       + p['b_post'].reshape(1, -1, 1, 1))


if __name__ == "__main__":
    # Small shapes consistent with the module: batch=2, high channels=8,
    # low = out channels = 16, r=4 -> bottleneck 4, spatial 16x16 (NCHW).
    N, H, W = 2, 16, 16
    CH_HIGH, C_OUT, R = 8, 16, 4
    CB = C_OUT // R

    key = jax.random.PRNGKey(0)
    k_xh, k_xl, k_p = jax.random.split(key, 3)
    xh = jax.random.normal(k_xh, (N, CH_HIGH, H, W), jnp.float32)
    xl = jax.random.normal(k_xl, (N, C_OUT, H, W), jnp.float32)
    params = make_params(k_p, CH_HIGH, C_OUT, CB)

    fuse = jax.jit(asym_bi_cha_fuse_reduce)
    out = jax.block_until_ready(fuse(xh, xl, params))
    ref = jax.block_until_ready(reference(xh, xl, params))

    assert out.shape == (N, C_OUT, H, W)
    max_err = jnp.max(jnp.abs(out - ref))
    # Tolerance sized for bf16 MXU operands (f32 accumulation) vs f32 reference.
    assert jnp.allclose(out, ref, atol=1.5e-1, rtol=5e-2), f"max abs err {max_err}"

    print("KERNEL_OK")
</pallas_src>

<mosaic_0001>
module attributes {stable_mosaic.version = 11 : i64} {
  func.func @kernel(%arg0: i32, %arg1: memref<8x512xf32, #tpu.memory_space<vmem>>, %arg2: memref<16x512xf32, #tpu.memory_space<vmem>>, %arg3: memref<80x144xbf16, #tpu.memory_space<vmem>>, %arg4: memref<80x1xf32, #tpu.memory_space<vmem>>, %arg5: memref<1x4608xf32, #tpu.memory_space<vmem>>, %arg6: memref<512x8xbf16, #tpu.memory_space<vmem>>, %arg7: memref<8x512xbf16, #tpu.memory_space<vmem>>, %arg8: memref<16x512xf32, #tpu.memory_space<vmem>>, %arg9: memref<144x512xbf16, #tpu.memory_space<vmem>>) attributes {dimension_semantics = [#tpu.dimension_semantics<arbitrary>], iteration_bounds = array<i64: 1>, scalar_prefetch = 0 : i64, scratch_operands = 1 : i64, tpu.core_type = #tpu.core_type<tc>, window_params = [{pipeline_mode = #tpu.pipeline_mode<synchronous>, transform_indices = @transform_0, window_bounds = array<i64: 8, 512>}, {pipeline_mode = #tpu.pipeline_mode<synchronous>, transform_indices = @transform_1, window_bounds = array<i64: 16, 512>}, {pipeline_mode = #tpu.pipeline_mode<synchronous>, transform_indices = @transform_2, window_bounds = array<i64: 80, 144>}, {pipeline_mode = #tpu.pipeline_mode<synchronous>, transform_indices = @transform_3, window_bounds = array<i64: 80, 1>}, {pipeline_mode = #tpu.pipeline_mode<synchronous>, transform_indices = @transform_4, window_bounds = array<i64: 1, 4608>}, {pipeline_mode = #tpu.pipeline_mode<synchronous>, transform_indices = @transform_5, window_bounds = array<i64: 512, 8>}, {pipeline_mode = #tpu.pipeline_mode<synchronous>, transform_indices = @transform_6, window_bounds = array<i64: 8, 512>}, {pipeline_mode = #tpu.pipeline_mode<synchronous>, transform_indices = @transform_7, window_bounds = array<i64: 16, 512>}]} {
    %c0 = arith.constant 0 : index
    %c0_0 = arith.constant 0 : index
    %0 = vector.load %arg1[%c0, %c0_0] : memref<8x512xf32, #tpu.memory_space<vmem>>, vector<8x512xf32>
    %c0_1 = arith.constant 0 : index
    %c0_2 = arith.constant 0 : index
    %1 = vector.load %arg2[%c0_1, %c0_2] : memref<16x512xf32, #tpu.memory_space<vmem>>, vector<16x512xf32>
    %c0_3 = arith.constant 0 : index
    %c0_4 = arith.constant 0 : index
    %2 = vector.load %arg3[%c0_3, %c0_4] : memref<80x144xbf16, #tpu.memory_space<vmem>>, vector<16x8xbf16>
    %3 = arith.truncf %0 : vector<8x512xf32> to vector<8x512xbf16>
    %c0_5 = arith.constant 0 : index
    %c0_6 = arith.constant 0 : index
    %4 = vector.load %arg4[%c0_5, %c0_6] : memref<80x1xf32, #tpu.memory_space<vmem>>, vector<16x1xf32>
    %cst = arith.constant dense<0.000000e+00> : vector<16x512xf32>
    %5 = tpu.matmul %2, %3, %cst {dimension_numbers = #tpu.dot_dimension_numbers<[1], [0], [0], [1], [0, 0, 1, 1], [], []>} : vector<16x8xbf16>, vector<8x512xbf16>, vector<16x512xf32> -> vector<16x512xf32>
    %6 = vector.broadcast %4 : vector<16x1xf32> to vector<16x512xf32>
    %7 = arith.addf %5, %6 : vector<16x512xf32>
    %cst_7 = arith.constant 0.000000e+00 : f32
    %8 = vector.broadcast %cst_7 : f32 to vector<16x512xf32>
    %9 = arith.maximumf %7, %8 : vector<16x512xf32>
    %10 = arith.truncf %9 : vector<16x512xf32> to vector<16x512xbf16>
    %c0_8 = arith.constant 0 : index
    %c0_9 = arith.constant 0 : index
    %11 = vector.load %arg6[%c0_8, %c0_9] : memref<512x8xbf16, #tpu.memory_space<vmem>>, vector<512x8xbf16>
    %cst_10 = arith.constant dense<0.000000e+00> : vector<16x8xf32>
    %12 = tpu.matmul %10, %11, %cst_10 {dimension_numbers = #tpu.dot_dimension_numbers<[1], [0], [0], [1], [0, 0, 1, 1], [], []>} : vector<16x512xbf16>, vector<512x8xbf16>, vector<16x8xf32> -> vector<16x8xf32>
    %13 = arith.truncf %12 : vector<16x8xf32> to vector<16x8xbf16>
    %c0_11 = arith.constant 0 : index
    %c0_12 = arith.constant 0 : index
    %14 = vector.load %arg7[%c0_11, %c0_12] : memref<8x512xbf16, #tpu.memory_space<vmem>>, vector<8x512xbf16>
    %cst_13 = arith.constant dense<0.000000e+00> : vector<16x512xf32>
    %15 = tpu.matmul %13, %14, %cst_13 {dimension_numbers = #tpu.dot_dimension_numbers<[1], [0], [0], [1], [0, 0, 1, 1], [], []>} : vector<16x8xbf16>, vector<8x512xbf16>, vector<16x512xf32> -> vector<16x512xf32>
    %16 = tpu.concatenate %15, %1 in 0 : vector<16x512xf32>, vector<16x512xf32> -> vector<32x512xf32>
    %17 = arith.truncf %16 : vector<32x512xf32> to vector<32x512xbf16>
    %c16 = arith.constant 16 : index
    %c0_14 = arith.constant 0 : index
    %18 = vector.load %arg3[%c16, %c0_14] : memref<80x144xbf16, #tpu.memory_space<vmem>>, vector<8x32xbf16>
    %c16_15 = arith.constant 16 : index
    %c0_16 = arith.constant 0 : index
    %19 = vector.load %arg4[%c16_15, %c0_16] : memref<80x1xf32, #tpu.memory_space<vmem>>, vector<8x1xf32>
    %cst_17 = arith.constant dense<0.000000e+00> : vector<8x512xf32>
    %20 = tpu.matmul %18, %17, %cst_17 {dimension_numbers = #tpu.dot_dimension_numbers<[1], [0], [0], [1], [0, 0, 1, 1], [], []>} : vector<8x32xbf16>, vector<32x512xbf16>, vector<8x512xf32> -> vector<8x512xf32>
    %21 = vector.broadcast %19 : vector<8x1xf32> to vector<8x512xf32>
    %22 = arith.addf %20, %21 : vector<8x512xf32>
    %cst_18 = arith.constant 0.000000e+00 : f32
    %23 = vector.broadcast %cst_18 : f32 to vector<8x512xf32>
    %24 = arith.maximumf %22, %23 : vector<8x512xf32>
    %c32 = arith.constant 32 : index
    %c0_19 = arith.constant 0 : index
    %25 = vector.load %arg3[%c32, %c0_19] : memref<80x144xbf16, #tpu.memory_space<vmem>>, vector<32x8xbf16>
    %26 = arith.truncf %24 : vector<8x512xf32> to vector<8x512xbf16>
    %c32_20 = arith.constant 32 : index
    %c0_21 = arith.constant 0 : index
    %27 = vector.load %arg4[%c32_20, %c0_21] : memref<80x1xf32, #tpu.memory_space<vmem>>, vector<32x1xf32>
    %cst_22 = arith.constant dense<0.000000e+00> : vector<32x512xf32>
    %28 = tpu.matmul %25, %26, %cst_22 {dimension_numbers = #tpu.dot_dimension_numbers<[1], [0], [0], [1], [0, 0, 1, 1], [], []>} : vector<32x8xbf16>, vector<8x512xbf16>, vector<32x512xf32> -> vector<32x512xf32>
    %29 = vector.broadcast %27 : vector<32x1xf32> to vector<32x512xf32>
    %30 = arith.addf %28, %29 : vector<32x512xf32>
    %31 = arith.negf %30 : vector<32x512xf32>
    %32 = math.exp %31 : vector<32x512xf32>
    %cst_23 = arith.constant 1.000000e+00 : f32
    %33 = vector.broadcast %cst_23 : f32 to vector<32x512xf32>
    %34 = arith.addf %33, %32 : vector<32x512xf32>
    %35 = arith.divf %33, %34 : vector<32x512xf32>
    %36 = vector.extract_strided_slice %35 {offsets = [0, 0], sizes = [16, 512], strides = [1, 1]} : vector<32x512xf32> to vector<16x512xf32>
    %37 = vector.extract_strided_slice %35 {offsets = [16, 0], sizes = [16, 512], strides = [1, 1]} : vector<32x512xf32> to vector<16x512xf32>
    %cst_24 = arith.constant 2.000000e+00 : f32
    %38 = vector.broadcast %cst_24 : f32 to vector<16x512xf32>
    %39 = arith.mulf %38, %1 : vector<16x512xf32>
    %40 = arith.mulf %39, %36 : vector<16x512xf32>
    %cst_25 = arith.constant 2.000000e+00 : f32
    %41 = vector.broadcast %cst_25 : f32 to vector<16x512xf32>
    %42 = arith.mulf %41, %9 : vector<16x512xf32>
    %43 = arith.mulf %42, %37 : vector<16x512xf32>
    %44 = arith.addf %40, %43 : vector<16x512xf32>
    %c17_i32 = arith.constant 17 : i32
    %45 = tpu.dynamic_rotate %44 by %c17_i32 dim 1 : vector<16x512xf32>, i32 -> vector<16x512xf32>
    %c0_26 = arith.constant 0 : index
    %c0_27 = arith.constant 0 : index
    %46 = vector.load %arg5[%c0_26, %c0_27] : memref<1x4608xf32, #tpu.memory_space<vmem>>, vector<1x512xf32>
    %47 = vector.broadcast %46 : vector<1x512xf32> to vector<16x512xf32>
    %48 = arith.mulf %45, %47 : vector<16x512xf32>
    %49 = arith.truncf %48 : vector<16x512xf32> to vector<16x512xbf16>
    %c0_28 = arith.constant 0 : index
    %c0_29 = arith.constant 0 : index
    %50 = vector.load %arg9[%c0_28, %c0_29] : memref<144x512xbf16, #tpu.memory_space<vmem>>, vector<16x512xbf16>
    tpu.vector_store %arg9[%c0_28, %c0_29], %49 {strides = array<i32>} : memref<144x512xbf16, #tpu.memory_space<vmem>>, vector<16x512xbf16>,
    %c16_i32 = arith.constant 16 : i32
    %51 = tpu.dynamic_rotate %44 by %c16_i32 dim 1 : vector<16x512xf32>, i32 -> vector<16x512xf32>
    %c0_30 = arith.constant 0 : index
    %c512 = arith.constant 512 : index
    %52 = vector.load %arg5[%c0_30, %c512] : memref<1x4608xf32, #tpu.memory_space<vmem>>, vector<1x512xf32>
    %53 = vector.broadcast %52 : vector<1x512xf32> to vector<16x512xf32>
    %54 = arith.mulf %51, %53 : vector<16x512xf32>
    %55 = arith.truncf %54 : vector<16x512xf32> to vector<16x512xbf16>
    %c16_31 = arith.constant 16 : index
    %c0_32 = arith.constant 0 : index
    %56 = vector.load %arg9[%c16_31, %c0_32] : memref<144x512xbf16, #tpu.memory_space<vmem>>, vector<16x512xbf16>
    tpu.vector_store %arg9[%c16_31, %c0_32], %55 {strides = array<i32>} : memref<144x512xbf16, #tpu.memory_space<vmem>>, vector<16x512xbf16>,
    %c15_i32 = arith.constant 15 : i32
    %57 = tpu.dynamic_rotate %44 by %c15_i32 dim 1 : vector<16x512xf32>, i32 -> vector<16x512xf32>
    %c0_33 = arith.constant 0 : index
    %c1024 = arith.constant 1024 : index
    %58 = vector.load %arg5[%c0_33, %c1024] : memref<1x4608xf32, #tpu.memory_space<vmem>>, vector<1x512xf32>
    %59 = vector.broadcast %58 : vector<1x512xf32> to vector<16x512xf32>
    %60 = arith.mulf %57, %59 : vector<16x512xf32>
    %61 = arith.truncf %60 : vector<16x512xf32> to vector<16x512xbf16>
    %c32_34 = arith.constant 32 : index
    %c0_35 = arith.constant 0 : index
    %62 = vector.load %arg9[%c32_34, %c0_35] : memref<144x512xbf16, #tpu.memory_space<vmem>>, vector<16x512xbf16>
    tpu.vector_store %arg9[%c32_34, %c0_35], %61 {strides = array<i32>} : memref<144x512xbf16, #tpu.memory_space<vmem>>, vector<16x512xbf16>,
    %c1_i32 = arith.constant 1 : i32
    %63 = tpu.dynamic_rotate %44 by %c1_i32 dim 1 : vector<16x512xf32>, i32 -> vector<16x512xf32>
    %c0_36 = arith.constant 0 : index
    %c1536 = arith.constant 1536 : index
    %64 = vector.load %arg5[%c0_36, %c1536] : memref<1x4608xf32, #tpu.memory_space<vmem>>, vector<1x512xf32>
    %65 = vector.broadcast %64 : vector<1x512xf32> to vector<16x512xf32>
    %66 = arith.mulf %63, %65 : vector<16x512xf32>
    %67 = arith.truncf %66 : vector<16x512xf32> to vector<16x512xbf16>
    %c48 = arith.constant 48 : index
    %c0_37 = arith.constant 0 : index
    %68 = vector.load %arg9[%c48, %c0_37] : memref<144x512xbf16, #tpu.memory_space<vmem>>, vector<16x512xbf16>
    tpu.vector_store %arg9[%c48, %c0_37], %67 {strides = array<i32>} : memref<144x512xbf16, #tpu.memory_space<vmem>>, vector<16x512xbf16>,
    %69 = arith.truncf %44 : vector<16x512xf32> to vector<16x512xbf16>
    %c64 = arith.constant 64 : index
    %c0_38 = arith.constant 0 : index
    %70 = vector.load %arg9[%c64, %c0_38] : memref<144x512xbf16, #tpu.memory_space<vmem>>, vector<16x512xbf16>
    tpu.vector_store %arg9[%c64, %c0_38], %69 {strides = array<i32>} : memref<144x512xbf16, #tpu.memory_space<vmem>>, vector<16x512xbf16>,
    %c511_i32 = arith.constant 511 : i32
    %71 = tpu.dynamic_rotate %44 by %c511_i32 dim 1 : vector<16x512xf32>, i32 -> vector<16x512xf32>
    %c0_39 = arith.constant 0 : index
    %c2560 = arith.constant 2560 : index
    %72 = vector.load %arg5[%c0_39, %c2560] : memref<1x4608xf32, #tpu.memory_space<vmem>>, vector<1x512xf32>
    %73 = vector.broadcast %72 : vector<1x512xf32> to vector<16x512xf32>
    %74 = arith.mulf %71, %73 : vector<16x512xf32>
    %75 = arith.truncf %74 : vector<16x512xf32> to vector<16x512xbf16>
    %c80 = arith.constant 80 : index
    %c0_40 = arith.constant 0 : index
    %76 = vector.load %arg9[%c80, %c0_40] : memref<144x512xbf16, #tpu.memory_space<vmem>>, vector<16x512xbf16>
    tpu.vector_store %arg9[%c80, %c0_40], %75 {strides = array<i32>} : memref<144x512xbf16, #tpu.memory_space<vmem>>, vector<16x512xbf16>,
    %c497_i32 = arith.constant 497 : i32
    %77 = tpu.dynamic_rotate %44 by %c497_i32 dim 1 : vector<16x512xf32>, i32 -> vector<16x512xf32>
    %c0_41 = arith.constant 0 : index
    %c3072 = arith.constant 3072 : index
    %78 = vector.load %arg5[%c0_41, %c3072] : memref<1x4608xf32, #tpu.memory_space<vmem>>, vector<1x512xf32>
    %79 = vector.broadcast %78 : vector<1x512xf32> to vector<16x512xf32>
    %80 = arith.mulf %77, %79 : vector<16x512xf32>
    %81 = arith.truncf %80 : vector<16x512xf32> to vector<16x512xbf16>
    %c96 = arith.constant 96 : index
    %c0_42 = arith.constant 0 : index
    %82 = vector.load %arg9[%c96, %c0_42] : memref<144x512xbf16, #tpu.memory_space<vmem>>, vector<16x512xbf16>
    tpu.vector_store %arg9[%c96, %c0_42], %81 {strides = array<i32>} : memref<144x512xbf16, #tpu.memory_space<vmem>>, vector<16x512xbf16>,
    %c496_i32 = arith.constant 496 : i32
    %83 = tpu.dynamic_rotate %44 by %c496_i32 dim 1 : vector<16x512xf32>, i32 -> vector<16x512xf32>
    %c0_43 = arith.constant 0 : index
    %c3584 = arith.constant 3584 : index
    %84 = vector.load %arg5[%c0_43, %c3584] : memref<1x4608xf32, #tpu.memory_space<vmem>>, vector<1x512xf32>
    %85 = vector.broadcast %84 : vector<1x512xf32> to vector<16x512xf32>
    %86 = arith.mulf %83, %85 : vector<16x512xf32>
    %87 = arith.truncf %86 : vector<16x512xf32> to vector<16x512xbf16>
    %c112 = arith.constant 112 : index
    %c0_44 = arith.constant 0 : index
    %88 = vector.load %arg9[%c112, %c0_44] : memref<144x512xbf16, #tpu.memory_space<vmem>>, vector<16x512xbf16>
    tpu.vector_store %arg9[%c112, %c0_44], %87 {strides = array<i32>} : memref<144x512xbf16, #tpu.memory_space<vmem>>, vector<16x512xbf16>,
    %c495_i32 = arith.constant 495 : i32
    %89 = tpu.dynamic_rotate %44 by %c495_i32 dim 1 : vector<16x512xf32>, i32 -> vector<16x512xf32>
    %c0_45 = arith.constant 0 : index
    %c4096 = arith.constant 4096 : index
    %90 = vector.load %arg5[%c0_45, %c4096] : memref<1x4608xf32, #tpu.memory_space<vmem>>, vector<1x512xf32>
    %91 = vector.broadcast %90 : vector<1x512xf32> to vector<16x512xf32>
    %92 = arith.mulf %89, %91 : vector<16x512xf32>
    %93 = arith.truncf %92 : vector<16x512xf32> to vector<16x512xbf16>
    %c128 = arith.constant 128 : index
    %c0_46 = arith.constant 0 : index
    %94 = vector.load %arg9[%c128, %c0_46] : memref<144x512xbf16, #tpu.memory_space<vmem>>, vector<16x512xbf16>
    tpu.vector_store %arg9[%c128, %c0_46], %93 {strides = array<i32>} : memref<144x512xbf16, #tpu.memory_space<vmem>>, vector<16x512xbf16>,
    %c64_47 = arith.constant 64 : index
    %c0_48 = arith.constant 0 : index
    %95 = vector.load %arg3[%c64_47, %c0_48] : memref<80x144xbf16, #tpu.memory_space<vmem>>, vector<16x144xbf16>
    %c0_49 = arith.constant 0 : index
    %c0_50 = arith.constant 0 : index
    %96 = vector.load %arg9[%c0_49, %c0_50] : memref<144x512xbf16, #tpu.memory_space<vmem>>, vector<144x512xbf16>
    %cst_51 = arith.constant dense<0.000000e+00> : vector<16x512xf32>
    %97 = tpu.matmul %95, %96, %cst_51 {dimension_numbers = #tpu.dot_dimension_numbers<[1], [0], [0], [1], [0, 0, 1, 1], [], []>} : vector<16x144xbf16>, vector<144x512xbf16>, vector<16x512xf32> -> vector<16x512xf32>
    %c64_52 = arith.constant 64 : index
    %c0_53 = arith.constant 0 : index
    %98 = vector.load %arg4[%c64_52, %c0_53] : memref<80x1xf32, #tpu.memory_space<vmem>>, vector<16x1xf32>
    %99 = vector.broadcast %98 : vector<16x1xf32> to vector<16x512xf32>
    %100 = arith.addf %97, %99 : vector<16x512xf32>
    %cst_54 = arith.constant 0.000000e+00 : f32
    %101 = vector.broadcast %cst_54 : f32 to vector<16x512xf32>
    %102 = arith.maximumf %100, %101 : vector<16x512xf32>
    %c0_55 = arith.constant 0 : index
    %c0_56 = arith.constant 0 : index
    %103 = vector.load %arg8[%c0_55, %c0_56] : memref<16x512xf32, #tpu.memory_space<vmem>>, vector<16x512xf32>
    tpu.vector_store %arg8[%c0_55, %c0_56], %102 {strides = array<i32>} : memref<16x512xf32, #tpu.memory_space<vmem>>, vector<16x512xf32>,
    return
  }
  func.func @transform_0(%arg0: i32) -> (i32, i32) {
    %c0_i32 = arith.constant 0 : i32
    %c0_i32_0 = arith.constant 0 : i32
    %c0_i32_1 = arith.constant 0 : i32
    return %c0_i32, %c0_i32_0 : i32, i32
  }
  func.func @transform_1(%arg0: i32) -> (i32, i32) {
    %c0_i32 = arith.constant 0 : i32
    %c0_i32_0 = arith.constant 0 : i32
    %c0_i32_1 = arith.constant 0 : i32
    return %c0_i32, %c0_i32_0 : i32, i32
  }
  func.func @transform_2(%arg0: i32) -> (i32, i32) {
    %c0_i32 = arith.constant 0 : i32
    %c0_i32_0 = arith.constant 0 : i32
    %c0_i32_1 = arith.constant 0 : i32
    return %c0_i32, %c0_i32_0 : i32, i32
  }
  func.func @transform_3(%arg0: i32) -> (i32, i32) {
    %c0_i32 = arith.constant 0 : i32
    %c0_i32_0 = arith.constant 0 : i32
    %c0_i32_1 = arith.constant 0 : i32
    return %c0_i32, %c0_i32_0 : i32, i32
  }
  func.func @transform_4(%arg0: i32) -> (i32, i32) {
    %c0_i32 = arith.constant 0 : i32
    %c0_i32_0 = arith.constant 0 : i32
    %c0_i32_1 = arith.constant 0 : i32
    return %c0_i32, %c0_i32_0 : i32, i32
  }
  func.func @transform_5(%arg0: i32) -> (i32, i32) {
    %c0_i32 = arith.constant 0 : i32
    %c0_i32_0 = arith.constant 0 : i32
    %c0_i32_1 = arith.constant 0 : i32
    return %c0_i32, %c0_i32_0 : i32, i32
  }
  func.func @transform_6(%arg0: i32) -> (i32, i32) {
    %c0_i32 = arith.constant 0 : i32
    %c0_i32_0 = arith.constant 0 : i32
    %c0_i32_1 = arith.constant 0 : i32
    return %c0_i32, %c0_i32_0 : i32, i32
  }
  func.func @transform_7(%arg0: i32) -> (i32, i32) {
    %c0_i32 = arith.constant 0 : i32
    %c0_i32_0 = arith.constant 0 : i32
    %c0_i32_1 = arith.constant 0 : i32
    return %c0_i32, %c0_i32_0 : i32, i32
  }
}

</mosaic_0001>

<bundles_post_ra>
// kernel: custom-call
= control target key start
LH: loop header
LB: loop body
LE: loop exit
PB: predicated region body
PF: predicated region fallthrough
CT: control target
= control target key end

     0   :  { %s6_s0 = inlined_call_operand.vmem [shape: f32[4608], index: 0, kind: output, shape index: {}]  }

// kernel: asym_bi_cha_fuse_reduce.1
= control target key start
LH: loop header
LB: loop body
LE: loop exit
PB: predicated region body
PF: predicated region fallthrough
CT: control target
= control target key end

     0   :  { %vm66_vm0 = vcmask 1043456   ;;  %v2372_v3 = vmov 0   ;;  %vm62_vm1 = vcmask 64512   ;;  %vm558_vm2 = vcmask 261120   ;;  %s2373_s19 = smov 112   ;;  %s2374_s20 = smov 15   ;;  %s3782_s0 = inlined_call_operand.vmem [shape: f32[8,512], index: 0, kind: input, shape index: {}]   ;;  %s3783_s2 = inlined_call_operand.vmem [shape: bf16[80,144], index: 2, kind: input, shape index: {}]   ;;  %s3784_s3 = inlined_call_operand.vmem [shape: f32[80,1], index: 3, kind: input, shape index: {}]   ;;  %s3785_s5 = inlined_call_operand.vmem [shape: bf16[512,8], index: 5, kind: input, shape index: {}]   ;;  %s3786_s6 = inlined_call_operand.vmem [shape: bf16[8,512], index: 6, kind: input, shape index: {}]   ;;  %s3787_s1 = inlined_call_operand.vmem [shape: f32[16,512], index: 1, kind: input, shape index: {}]   ;;  %s3788_s4 = inlined_call_operand.vmem [shape: f32[1,4608], index: 4, kind: input, shape index: {}]   ;;  %s3789_s7 = inlined_call_operand.vmem [shape: f32[16,512], index: 7, kind: output, shape index: {}]  }
   0x1   :  { %v27_v0 = vld [vmem:[%s3782_s0] sm:$0xff]  ;;  %v28_v1 = vld [vmem:[%s3782_s0 + $0x8] sm:$0xff]  ;;  %v29_v2 = vld [vmem:[%s3782_s0 + $0x10] sm:$0xff]  ;;  %2305 = vset.pattern.permute.xlu0 %v2372_v3  ;;  %2306 = vset.pattern.permute.xlu1 %v2372_v3  ;;  %s2375_s21 = smov 113   ;;  %s2376_s22 = smov 16  }
   0x2   :  { %v41_v4 = vpack.c.bf16 %v27_v0, %v27_v0  ;;  %v42_v5 = vpack.c.bf16 %v28_v1, %v28_v1  ;;  %v43_v6 = vpack.c.bf16 %v29_v2, %v29_v2  ;;  %v30_v7 = vld [vmem:[%s3782_s0 + $0x18] sm:$0xff]  ;;  %v1893_v8 = vld [vmem:[%s3783_s2] sm:$0xf]  ;;  %v2223_v9 = vld [vmem:[%s3783_s2 + $0x4] sm:$0xf0]  ;;  %2307 = vset.pattern.permute.xlu2 %v2372_v3  ;;  %s2377_s23 = smov 127  }
   0x3   :  { %v44_v10 = vpack.c.bf16 %v30_v7, %v30_v7  ;;  %v45_v11 = vld [vmem:[%s3784_s3] sm:$0xff]  ;;  %v1894_v15 = vor.u32 %v2223_v9, %v1893_v8  ;;  %v2231_v16 = vld [vmem:[%s3785_s5 + $0x38] sm:$0xff]  ;;  %v2230_v19 = vld [vmem:[%s3785_s5 + $0x30] sm:$0xff]  ;;  %s2378_s24 = smov 1   ;;  %s2379_s25 = smov 17  }
   0x4   :  { %v68_v12 = vsel %vm66_vm0, %v41_v4, 0  ;;  %v71_v13 = vsel %vm66_vm0, %v42_v5, 0  ;;  %v74_v14 = vsel %vm66_vm0, %v43_v6, 0  ;;  %49 = vperm.xlu0 %2305, %v45_v11   ;;  %v2239_v17 = vld [vmem:[%s3785_s5 + $0x78] sm:$0xff]  ;;  %v2238_v20 = vld [vmem:[%s3785_s5 + $0x70] sm:$0xff]  ;;  %v46_v21 = vld [vmem:[%s3784_s3 + $0x8] sm:$0xff] }
   0x5   :  { %86 = vmatpush.bf16.msra.mxu0 %v68_v12  ;;  %100 = vmatpush.bf16.msra.mxu1 %v71_v13  ;;  %v77_v18 = vsel %vm66_vm0, %v44_v10, 0  ;;  %v629_v22 = vld [vmem:[%s3784_s3 + $0x38] sm:$0xff]  ;;  %v2229_v25 = vld [vmem:[%s3785_s5 + $0x28] sm:$0xff]  ;;  %v2246_v27 = vld [vmem:[%s3785_s5 + $0xb0] sm:$0xff]  ;;  %s2380_s26 = smov 111  }
   0x6   :  { %114 = vmatpush.bf16.msra.mxu2 %v74_v14  ;;  %128 = vmatpush.bf16.msra.mxu3 %v77_v18  ;;  %v2247_v23 = vld [vmem:[%s3785_s5 + $0xb8] sm:$0xff]  ;;  %v2237_v26 = vld [vmem:[%s3785_s5 + $0x68] sm:$0xff]  ;;  %v2254_v28 = vld [vmem:[%s3785_s5 + $0xf0] sm:$0xff] }
   0x7   :  { %v2255_v24 = vld [vmem:[%s3785_s5 + $0xf8] sm:$0xff]  ;;  %v2228_v29 = vld [vmem:[%s3785_s5 + $0x20] sm:$0xff]  ;;  %v2245_v31 = vld [vmem:[%s3785_s5 + $0xa8] sm:$0xff] }
   0x8   :  { %1895 = vmatmul.msk.bf16.vlgmr.msra.gmra.mxu0 %vm62_vm1, %v1894_v15  ;;  %1896 = vmatmul.msk.bf16.vlgmr.msra.gmra.mxu1 %vm62_vm1, %v1894_v15  ;;  %v2236_v30 = vld [vmem:[%s3785_s5 + $0x60] sm:$0xff]  ;;  %v2253_v32 = vld [vmem:[%s3785_s5 + $0xe8] sm:$0xff]  ;;  %v2227_v33 = vld [vmem:[%s3785_s5 + $0x18] sm:$0xff] }
   0x9   :  { %403 = vmatpush.bf16.msrb.mxu0 %v2231_v16  ;;  %417 = vmatpush.bf16.msrb.mxu1 %v2239_v17  ;;  %v2235_v34 = vld [vmem:[%s3785_s5 + $0x58] sm:$0xff]  ;;  %v2244_v35 = vld [vmem:[%s3785_s5 + $0xa0] sm:$0xff]  ;;  %v2226_v37 = vld [vmem:[%s3785_s5 + $0x10] sm:$0xff] }
   0xa   :  { %1897 = vmatmul.msk.bf16.vlgmr.msra.gmra.mxu2 %vm62_vm1, %v1894_v15  ;;  %1898 = vmatmul.msk.bf16.vlgmr.msra.gmra.mxu3 %vm62_vm1, %v1894_v15  ;;  %v2252_v36 = vld [vmem:[%s3785_s5 + $0xe0] sm:$0xff]  ;;  %v2234_v38 = vld [vmem:[%s3785_s5 + $0x50] sm:$0xff]  ;;  %v2243_v39 = vld [vmem:[%s3785_s5 + $0x98] sm:$0xff] }
   0xb   :  { %431 = vmatpush.bf16.msrb.mxu2 %v2247_v23  ;;  %445 = vmatpush.bf16.msrb.mxu3 %v2255_v24  ;;  %v2251_v40 = vld [vmem:[%s3785_s5 + $0xd8] sm:$0xff]  ;;  %v2225_v41 = vld [vmem:[%s3785_s5 + $0x8] sm:$0xff]  ;;  %v2242_v43 = vld [vmem:[%s3785_s5 + $0x90] sm:$0xff] }
   0xc   :  { %54 = vperm.xlu0 %2305, %v46_v21   ;;  %v2233_v42 = vld [vmem:[%s3785_s5 + $0x48] sm:$0xff]  ;;  %v2250_v44 = vld [vmem:[%s3785_s5 + $0xd0] sm:$0xff]  ;;  %v2224_v45 = vld [vmem:[%s3785_s5] sm:$0xff] }
   0xd   :  { %404 = vmatpush.bf16.msrb.mxu0 %v2230_v19  ;;  %418 = vmatpush.bf16.msrb.mxu1 %v2238_v20  ;;  %v2232_v46 = vld [vmem:[%s3785_s5 + $0x40] sm:$0xff]  ;;  %v2241_v47 = vld [vmem:[%s3785_s5 + $0x88] sm:$0xff] }
   0xe   :  { %v2249_v48 = vld [vmem:[%s3785_s5 + $0xc8] sm:$0xff]  ;;  %v2240_v49 = vld [vmem:[%s3785_s5 + $0x80] sm:$0xff] }
   0xf   :  { %432 = vmatpush.bf16.msrb.mxu2 %v2246_v27  ;;  %446 = vmatpush.bf16.msrb.mxu3 %v2254_v28  ;;  %v2248_v50 = vld [vmem:[%s3785_s5 + $0xc0] sm:$0xff]  ;;  %v461_v18 = vld [vmem:[%s3786_s6 + $0x8] sm:$0xff] }
  0x10   :  { %v460_v17 = vld [vmem:[%s3786_s6] sm:$0xff]  ;;  %v466_v21 = vunpack.c.l.b16 %v461_v18 }
  0x11   :  { %405 = vmatpush.bf16.msrb.mxu0 %v2229_v25  ;;  %419 = vmatpush.bf16.msrb.mxu1 %v2237_v26  ;;  %v464_v19 = vunpack.c.l.b16 %v460_v17  ;;  %v465_v20 = vunpack.c.h.b16 %v460_v17 }
  0x12   :  { %v470_v25 = vpack.c.b16 %v466_v21, %v466_v21 }
  0x13   :  { %433 = vmatpush.bf16.msrb.mxu2 %v2245_v31  ;;  %447 = vmatpush.bf16.msrb.mxu3 %v2253_v32  ;;  %v468_v23 = vpack.c.b16 %v464_v19, %v464_v19  ;;  %v469_v24 = vpack.c.b16 %v465_v20, %v465_v20  ;;  %v551_v20 = vld [vmem:[%s3783_s2 + $0x10] sm:$0xf] }
  0x14   :  { %647 = vperm.xlu0 %2305, %v629_v22   ;;  %v467_v22 = vunpack.c.h.b16 %v461_v18 }
  0x15   :  { %406 = vmatpush.bf16.msrb.mxu0 %v2228_v29  ;;  %420 = vmatpush.bf16.msrb.mxu1 %v2236_v30  ;;  %v476_v27 = vsel %vm66_vm0, %v468_v23, 0  ;;  %v479_v28 = vsel %vm66_vm0, %v469_v24, 0  ;;  %v482_v29 = vsel %vm66_vm0, %v470_v25, 0 }
  0x16   :  { %v471_v26 = vpack.c.b16 %v467_v22, %v467_v22 }
  0x17   :  { %434 = vmatpush.bf16.msrb.mxu2 %v2244_v35  ;;  %448 = vmatpush.bf16.msrb.mxu3 %v2252_v36 }
  0x18   :  { %v485_v30 = vsel %vm66_vm0, %v471_v26, 0 }
  0x19   :  { %407 = vmatpush.bf16.msrb.mxu0 %v2227_v33  ;;  %421 = vmatpush.bf16.msrb.mxu1 %v2235_v34 }
  0x1b   :  { %435 = vmatpush.bf16.msrb.mxu2 %v2243_v39  ;;  %449 = vmatpush.bf16.msrb.mxu3 %v2251_v40 }
  0x1d   :  { %408 = vmatpush.bf16.msrb.mxu0 %v2226_v37  ;;  %422 = vmatpush.bf16.msrb.mxu1 %v2234_v38 }
  0x1f   :  { %436 = vmatpush.bf16.msrb.mxu2 %v2242_v43  ;;  %450 = vmatpush.bf16.msrb.mxu3 %v2250_v44 }
  0x21   :  { %409 = vmatpush.bf16.msrb.mxu0 %v2225_v41  ;;  %423 = vmatpush.bf16.msrb.mxu1 %v2233_v42 }
  0x23   :  { %437 = vmatpush.bf16.msrb.mxu2 %v2241_v47  ;;  %451 = vmatpush.bf16.msrb.mxu3 %v2249_v48  ;;  %v2614_v47 = vld [vmem:[%s3787_s1 + $0x20] sm:$0xff]  ;;  %v2619_v48 = vld [vmem:[%s3787_s1 + $0x8] sm:$0xff] }
  0x25   :  { %410 = vmatpush.bf16.msrb.mxu0 %v2224_v45  ;;  %424 = vmatpush.bf16.msrb.mxu1 %v2232_v46  ;;  %v2609_v46 = vld [vmem:[%s3787_s1] sm:$0xff] }
  0x27   :  { %438 = vmatpush.bf16.msrb.mxu2 %v2240_v49  ;;  %452 = vmatpush.bf16.msrb.mxu3 %v2248_v50  ;;  %v547_v49 = vpack.c.bf16 %v2614_v47, %v2609_v46  ;;  %v2626_v50 = vld [vmem:[%s3787_s1 + $0x28] sm:$0xff] }
  0x29   :  { %494 = vmatpush.bf16.msra.mxu0 %v476_v27  ;;  %508 = vmatpush.bf16.msra.mxu1 %v479_v28 }
  0x2b   :  { %522 = vmatpush.bf16.msra.mxu2 %v482_v29  ;;  %536 = vmatpush.bf16.msra.mxu3 %v485_v30 }
  0x76   :  { %v50_v51 = vpop.permute.xlu0 %49 }
  0x7e   :  { %v55_v54 = vpop.permute.xlu0 %54 }
  0x85   :  { %v88_v52 = vpop.f32.mrf.mxu0  ;;  %v102_v53 = vpop.f32.mrf.mxu1 }
  0x86   :  { %v2552_v55 = vadd.f32 %v88_v52, %v50_v51  ;;  %v2554_v56 = vadd.f32 %v102_v53, %v50_v51  ;;  %v2633_v52 = vld [vmem:[%s3787_s1 + $0x10] sm:$0xff] }
  0x87   :  { %v2638_v53 = vld [vmem:[%s3787_s1 + $0x30] sm:$0xff] }
  0x88   :  { %v135_v63 = vmax.f32 %v2552_v55, 0.0  ;;  %v136_v0 = vmax.f32 %v2554_v56, 0.0  ;;  %v2743_v55 = vmul.f32 2.0, %v2614_v47  ;;  %v2755_v47 = vpop.permute.xlu0 %647 }
  0x8d   :  { %v116_v57 = vpop.f32.mrf.mxu2  ;;  %v130_v58 = vpop.f32.mrf.mxu3 }
  0x8e   :  { %v90_v59 = vpop.f32.mrf.mxu0  ;;  %v104_v60 = vpop.f32.mrf.mxu1  ;;  %v2572_v5 = vadd.f32 %v116_v57, %v50_v51  ;;  %v2574_v6 = vadd.f32 %v130_v58, %v50_v51  ;;  %v548_v51 = vpack.c.bf16 %v2626_v50, %v2619_v48  ;;  %v549_v57 = vpack.c.bf16 %v2638_v53, %v2633_v52  ;;  %v2650_v58 = vld [vmem:[%s3787_s1 + $0x38] sm:$0xff] }
  0x8f   :  { %v2556_v61 = vadd.f32 %v90_v59, %v55_v54  ;;  %v2558_v62 = vadd.f32 %v104_v60, %v55_v54  ;;  %v552_v60 = vld [vmem:[%s3784_s3 + $0x10] sm:$0xff] }
  0x90   :  { %v137_v11 = vmax.f32 %v2572_v5, 0.0  ;;  %v138_v12 = vmax.f32 %v2574_v6, 0.0  ;;  %555 = vperm.xlu1 %2306, %v552_v60  }
  0x91   :  { %v139_v1 = vmax.f32 %v2556_v61, 0.0  ;;  %v140_v2 = vmax.f32 %v2558_v62, 0.0  ;;  %v2750_v62 = vmul.f32 2.0, %v2619_v48 }
  0x93   :  { %v143_v3 = vpack.c.bf16 %v139_v1, %v135_v63  ;;  %v144_v4 = vpack.c.bf16 %v140_v2, %v136_v0 }
  0x95   :  { %v118_v7 = vpop.f32.mrf.mxu2  ;;  %v132_v8 = vpop.f32.mrf.mxu3  ;;  %411 = vmatmul.bf16.vlgmr.msrb.gmra.mxu0 %v143_v3  ;;  %425 = vmatmul.bf16.vlgmr.msrb.gmra.mxu1 %v144_v4  ;;  %v626_v3 = vld [vmem:[%s3784_s3 + $0x20] sm:$0xff] }
  0x96   :  { %v2576_v9 = vadd.f32 %v118_v7, %v55_v54  ;;  %v2578_v10 = vadd.f32 %v132_v8, %v55_v54  ;;  %568 = vmatpush.bf16.msrb.mxu0 %v547_v49  ;;  %581 = vmatpush.bf16.msrb.mxu1 %v548_v51  ;;  %v2643_v54 = vld [vmem:[%s3787_s1 + $0x18] sm:$0xff]  ;;  %v628_v49 = vld [vmem:[%s3784_s3 + $0x30] sm:$0xff] }
  0x97   :  { %v550_v59 = vpack.c.bf16 %v2650_v58, %v2643_v54 }
  0x98   :  { %v141_v13 = vmax.f32 %v2576_v9, 0.0  ;;  %v142_v14 = vmax.f32 %v2578_v10, 0.0  ;;  %632 = vperm.xlu1 %2306, %v626_v3  }
  0x9a   :  { %v145_v15 = vpack.c.bf16 %v141_v13, %v137_v11  ;;  %v146_v16 = vpack.c.bf16 %v142_v14, %v138_v12 }
  0x9c   :  { %439 = vmatmul.bf16.vlgmr.msrb.gmra.mxu2 %v145_v15  ;;  %453 = vmatmul.bf16.vlgmr.msrb.gmra.mxu3 %v146_v16 }
  0x9d   :  { %594 = vmatpush.bf16.msrb.mxu2 %v549_v57  ;;  %607 = vmatpush.bf16.msrb.mxu3 %v550_v59 }
 0x102   :  { %v556_v25 = vpop.permute.xlu1 %555 }
 0x112   :  { %v412_v31 = vpop.f32.mrf.mxu0  ;;  %v426_v32 = vpop.f32.mrf.mxu1 }
 0x113   :  { %v427_v37 = vadd.f32 %v426_v32, %v412_v31  ;;  %v2037_v32 = vld [vmem:[%s3783_s2 + $0x20] sm:$0xf] }
 0x11a   :  { %v414_v35 = vpop.f32.mrf.mxu0  ;;  %v428_v36 = vpop.f32.mrf.mxu1 }
 0x11b   :  { %v429_v38 = vadd.f32 %v428_v36, %v414_v35 }
 0x11f   :  { %v440_v33 = vpop.f32.mrf.mxu2  ;;  %v454_v34 = vpop.f32.mrf.mxu3 }
 0x120   :  { %v441_v39 = vadd.f32 %v440_v33, %v427_v37  ;;  %v2256_v33 = vld [vmem:[%s3783_s2 + $0x24] sm:$0xf0] }
 0x122   :  { %v455_v43 = vadd.f32 %v454_v34, %v441_v39 }
 0x127   :  { %v442_v40 = vpop.f32.mrf.mxu2  ;;  %v456_v42 = vpop.f32.mrf.mxu3 }
 0x128   :  { %v443_v41 = vadd.f32 %v442_v40, %v429_v38  ;;  %v2038_v38 = vor.u32 %v2256_v33, %v2037_v32 }
 0x12a   :  { %v457_v44 = vadd.f32 %v456_v42, %v443_v41  ;;  %v627_v41 = vld [vmem:[%s3784_s3 + $0x28] sm:$0xff] }
 0x12b   :  { %637 = vperm.xlu2 %2307, %v627_v41  }
 0x12c   :  { %v459_v45 = vpack.c.bf16 %v457_v44, %v455_v43 }
 0x12e   :  { %2027 = vmatmul.msk.bf16.vlgmr.msra.gmra.mxu0 %vm62_vm1, %v459_v45  ;;  %2028 = vmatmul.msk.bf16.vlgmr.msra.gmra.mxu1 %vm62_vm1, %v459_v45 }
 0x12f   :  { %2029 = vmatmul.msk.bf16.vlgmr.msra.gmra.mxu2 %vm62_vm1, %v459_v45  ;;  %2030 = vmatmul.msk.bf16.vlgmr.msra.gmra.mxu3 %vm62_vm1, %v459_v45 }
 0x133   :  { %642 = vperm.xlu2 %2307, %v628_v49  }
 0x1ab   :  { %v496_v4 = vpop.f32.mrf.mxu0  ;;  %v510_v7 = vpop.f32.mrf.mxu1 }
 0x1b2   :  { %v524_v8 = vpop.f32.mrf.mxu2  ;;  %v538_v15 = vpop.f32.mrf.mxu3 }
 0x1b3   :  { %v498_v16 = vpop.f32.mrf.mxu0  ;;  %v512_v17 = vpop.f32.mrf.mxu1 }
 0x1b4   :  { %v543_v18 = vpack.c.bf16 %v498_v16, %v496_v4  ;;  %v544_v19 = vpack.c.bf16 %v512_v17, %v510_v7  ;;  %v2041_v7 = vld [vmem:[%s3783_s2 + $0x30] sm:$0xf] }
 0x1b6   :  { %569 = vmatpush.bf16.msrb.mxu0 %v543_v18  ;;  %582 = vmatpush.bf16.msrb.mxu1 %v544_v19  ;;  %v633_v18 = vpop.permute.xlu1 %632 }
 0x1b9   :  { %2031 = vmatmul.msk.bf16.vlgmr.msrb.gmra.mxu0 %vm558_vm2, %v551_v20  ;;  %2032 = vmatmul.msk.bf16.vlgmr.msrb.gmra.mxu1 %vm558_vm2, %v551_v20 }
 0x1ba   :  { %v526_v21 = vpop.f32.mrf.mxu2  ;;  %v540_v22 = vpop.f32.mrf.mxu3 }
 0x1bb   :  { %v545_v23 = vpack.c.bf16 %v526_v21, %v524_v8  ;;  %v546_v24 = vpack.c.bf16 %v540_v22, %v538_v15  ;;  %v2257_v8 = vld [vmem:[%s3783_s2 + $0x34] sm:$0xf0] }
 0x1bc   :  { %v2042_v17 = vor.u32 %v2257_v8, %v2041_v7 }
 0x1bd   :  { %595 = vmatpush.bf16.msrb.mxu2 %v545_v23  ;;  %608 = vmatpush.bf16.msrb.mxu3 %v546_v24 }
 0x1c0   :  { %2033 = vmatmul.msk.bf16.vlgmr.msrb.gmra.mxu2 %vm558_vm2, %v551_v20  ;;  %2034 = vmatmul.msk.bf16.vlgmr.msrb.gmra.mxu3 %vm558_vm2, %v551_v20 }
 0x236   :  { %v571_v26 = vpop.f32.mrf.mxu0  ;;  %v584_v27 = vpop.f32.mrf.mxu1 }
 0x237   :  { %v572_v28 = vadd.f32 %v571_v26, %v556_v25  ;;  %v585_v29 = vadd.f32 %v584_v27, %v556_v25 }
 0x239   :  { %v614_v30 = vmax.f32 %v572_v28, 0.0  ;;  %v615_v31 = vmax.f32 %v585_v29, 0.0 }
 0x23b   :  { %v622_v34 = vpack.c.bf16 %v614_v30, %v614_v30  ;;  %v623_v35 = vpack.c.bf16 %v615_v31, %v615_v31 }
 0x23d   :  { %v667_v36 = vsel %vm66_vm0, %v622_v34, 0  ;;  %v670_v37 = vsel %vm66_vm0, %v623_v35, 0 }
 0x23e   :  { %v573_v39 = vpop.f32.mrf.mxu0  ;;  %v586_v40 = vpop.f32.mrf.mxu1  ;;  %685 = vmatpush.bf16.msra.mxu0 %v667_v36  ;;  %704 = vmatpush.bf16.msra.mxu1 %v670_v37 }
 0x241   :  { %2043 = vmatmul.msk.bf16.vlgmr.msra.gmra.mxu0 %vm62_vm1, %v2038_v38  ;;  %2045 = vmatmul.msk.bf16.vlgmr.msra.gmra.mxu1 %vm62_vm1, %v2038_v38 }
 0x243   :  { %v597_v42 = vpop.f32.mrf.mxu2  ;;  %v610_v43 = vpop.f32.mrf.mxu3 }
 0x244   :  { %v598_v44 = vadd.f32 %v597_v42, %v556_v25  ;;  %v611_v45 = vadd.f32 %v610_v43, %v556_v25  ;;  %v2693_v25 = vpop.permute.xlu2 %637 }
 0x246   :  { %v616_v51 = vmax.f32 %v598_v44, 0.0  ;;  %v617_v57 = vmax.f32 %v611_v45, 0.0 }
 0x248   :  { %v624_v59 = vpack.c.bf16 %v616_v51, %v616_v51  ;;  %v625_v60 = vpack.c.bf16 %v617_v57, %v617_v57 }
 0x24a   :  { %v673_v3 = vsel %vm66_vm0, %v624_v59, 0  ;;  %v676_v4 = vsel %vm66_vm0, %v625_v60, 0 }
 0x24b   :  { %723 = vmatpush.bf16.msra.mxu2 %v673_v3  ;;  %742 = vmatpush.bf16.msra.mxu3 %v676_v4  ;;  %v612_v15 = vpop.f32.mrf.mxu3  ;;  %v599_v16 = vpop.f32.mrf.mxu2 }
 0x24c   :  { %v2703_v36 = vpop.permute.xlu2 %642 }
 0x24e   :  { %2047 = vmatmul.msk.bf16.vlgmr.msra.gmra.mxu2 %vm62_vm1, %v2038_v38  ;;  %2049 = vmatmul.msk.bf16.vlgmr.msra.gmra.mxu3 %vm62_vm1, %v2038_v38 }
 0x251   :  { %2044 = vmatmul.msk.bf16.gmra.mxu0 %vm62_vm1, %v2042_v17  ;;  %2046 = vmatmul.msk.bf16.gmra.mxu1 %vm62_vm1, %v2042_v17 }
 0x25e   :  { %2048 = vmatmul.msk.bf16.gmra.mxu2 %vm62_vm1, %v2042_v17  ;;  %2050 = vmatmul.msk.bf16.gmra.mxu3 %vm62_vm1, %v2042_v17 }
 0x2be   :  { %v687_v19 = vpop.f32.mrf.mxu0  ;;  %v706_v20 = vpop.f32.mrf.mxu1 }
 0x2bf   :  { %v688_v21 = vadd.f32 %v687_v19, %v633_v18  ;;  %v707_v22 = vadd.f32 %v706_v20, %v633_v18  ;;  %v2727_v20 = vmul.f32 2.0, %v136_v0 }
 0x2c1   :  { %v2051_v23 = vmul.f32 -1.442695, %v688_v21  ;;  %v2052_v24 = vmul.f32 -1.442695, %v707_v22  ;;  %v2731_v21 = vmul.f32 2.0, %v139_v1 }
 0x2c3   :  { %2308 = vpow2.f32 %v2051_v23  ;;  %v2737_v23 = vmul.f32 2.0, %v140_v2 }
 0x2c4   :  { %2310 = vpow2.f32 %v2052_v24  ;;  %v2740_v24 = vmul.f32 2.0, %v2609_v46 }
 0x2c6   :  { %v689_v26 = vpop.f32.mrf.mxu0  ;;  %v708_v27 = vpop.f32.mrf.mxu1 }
 0x2c7   :  { %v690_v28 = vadd.f32 %v689_v26, %v2693_v25  ;;  %v709_v29 = vadd.f32 %v708_v27, %v2693_v25  ;;  %v2758_v27 = vmul.f32 2.0, %v2626_v50 }
 0x2c9   :  { %v2309_v30 = vpop.eup %2308  ;;  %v2055_v31 = vmul.f32 -1.442695, %v690_v28  ;;  %v2056_v34 = vmul.f32 -1.442695, %v709_v29  ;;  %v2761_v28 = vmul.f32 2.0, %v2633_v52 }
 0x2ca   :  { %v2311_v32 = vpop.eup %2310  ;;  %v2697_v33 = vadd.f32 1.0, %v2309_v30 }
 0x2cb   :  { %v2699_v35 = vadd.f32 1.0, %v2311_v32  ;;  %2312 = vpow2.f32 %v2055_v31 }
 0x2cc   :  { %2314 = vrcp.f32 %v2697_v33  ;;  %v829_v61 = vand.u32 2147483648, %v2697_v33  ;;  %vm823_vm3 = vweird.f32 %v2697_v33 }
 0x2cd   :  { %2316 = vrcp.f32 %v2699_v35  ;;  %v844_v46 = vand.u32 2147483648, %v2699_v35  ;;  %vm838_vm4 = vweird.f32 %v2699_v35  ;;  %v842_v30 = vand.u32 2147483647, %v2699_v35 }
 0x2ce   :  { %2318 = vpow2.f32 %v2056_v34  ;;  %v692_v37 = vpop.f32.mrf.mxu0  ;;  %v711_v38 = vpop.f32.mrf.mxu1 }
 0x2cf   :  { %v693_v39 = vadd.f32 %v692_v37, %v2703_v36  ;;  %v712_v40 = vadd.f32 %v711_v38, %v2703_v36  ;;  %v830_v37 = vor.u32 1.1754944e-38, %v829_v61  ;;  %vm2809_vm9 = vcmp.eq.f32.partialorder %v842_v30, 8.507059e+37 }
 0x2d1   :  { %v2313_v41 = vpop.eup %2312  ;;  %v2059_v42 = vmul.f32 -1.442695, %v693_v39  ;;  %v725_v43 = vpop.f32.mrf.mxu2  ;;  %v2060_v51 = vmul.f32 -1.442695, %v712_v40 }
 0x2d2   :  { %v744_v44 = vpop.f32.mrf.mxu3  ;;  %v2707_v45 = vpop.eup %2314  ;;  %v2709_v49 = vadd.f32 1.0, %v2313_v41  ;;  %v726_v57 = vadd.f32 %v725_v43, %v633_v18 }
 0x2d3   :  { %v2711_v59 = vpop.eup %2316  ;;  %2320 = vpow2.f32 %v2059_v42  ;;  %v745_v60 = vadd.f32 %v744_v44, %v633_v18  ;;  %v819_v4 = vmul.f32 %v2707_v45, %v2697_v33  ;;  %v2723_v18 = vmul.f32 2.0, %v135_v63 }
 0x2d4   :  { %v2319_v3 = vpop.eup %2318  ;;  %2322 = vrcp.f32 %v2709_v49  ;;  %v2053_v8 = vmul.f32 -1.442695, %v726_v57  ;;  %v834_v15 = vmul.f32 %v2711_v59, %v2699_v35  ;;  %v827_v63 = vand.u32 2147483647, %v2697_v33 }
 0x2d5   :  { %v2716_v7 = vadd.f32 1.0, %v2319_v3  ;;  %2324 = vpow2.f32 %v2060_v51  ;;  %v2054_v16 = vmul.f32 -1.442695, %v745_v60  ;;  %v820_v17 = vsub.f32 1.0, %v819_v4 }
 0x2d6   :  { %v835_v0 = vsub.f32 1.0, %v834_v15  ;;  %v694_v1 = vpop.f32.mrf.mxu0  ;;  %v889_v31 = vand.u32 2147483648, %v2709_v49  ;;  %vm2772_vm5 = vcmp.eq.f32.partialorder %v827_v63, 8.507059e+37  ;;  %v713_v40 = vpop.f32.mrf.mxu1  ;;  %vm824_vm6 = vweird.f32 %v2707_v45 }
 0x2d7   :  { %2326 = vrcp.f32 %v2716_v7  ;;  %v821_v2 = vmul.f32 %v2707_v45, %v820_v17  ;;  %v695_v32 = vadd.f32 %v694_v1, %v2755_v47  ;;  %v2781_v42 = vor.u32 1.1754944e-38, %v844_v46  ;;  %vm2795_vm8 = vmor %vm823_vm3, %vm824_vm6 }
 0x2d8   :  { %2328 = vpow2.f32 %v2053_v8  ;;  %v836_v38 = vmul.f32 %v2711_v59, %v835_v0  ;;  %vm839_vm7 = vweird.f32 %v2711_v59  ;;  %v887_v57 = vand.u32 2147483647, %v2709_v49 }
 0x2d9   :  { %v2321_v19 = vpop.eup %2320  ;;  %2330 = vpow2.f32 %v2054_v16  ;;  %v727_v50 = vpop.f32.mrf.mxu2  ;;  %v822_v41 = vadd.f32 %v2707_v45, %v821_v2  ;;  %v2788_v3 = vor.u32 1.1754944e-38, %v889_v31  ;;  %v2063_v8 = vmul.f32 -1.442695, %v695_v32  ;;  %vm2822_vm12 = vmor %vm838_vm4, %vm839_vm7 }
 0x2da   :  { %v2733_v22 = vpop.eup %2322  ;;  %v2745_v56 = vadd.f32 1.0, %v2321_v19  ;;  %v714_v15 = vadd.f32 %v713_v40, %v2755_v47  ;;  %v837_v17 = vadd.f32 %v2711_v59, %v836_v38  ;;  %v902_v19 = vand.u32 2147483647, %v2716_v7 }
 0x2db   :  { %v2325_v26 = vpop.eup %2324  ;;  %v879_v48 = vmul.f32 %v2733_v22, %v2709_v49  ;;  %v826_v61 = vsel %vm2795_vm8, %v2707_v45, %v822_v41  ;;  %v904_v0 = vand.u32 2147483648, %v2716_v7  ;;  %vm883_vm10 = vweird.f32 %v2709_v49 }
 0x2dc   :  { %2332 = vrcp.f32 %v2745_v56  ;;  %v2777_v39 = vadd.f32 1.0, %v2325_v26  ;;  %v947_v33 = vand.u32 2147483647, %v2745_v56  ;;  %v949_v1 = vand.u32 2147483648, %v2745_v56 }
 0x2dd   :  { %v2766_v29 = vpop.eup %2326  ;;  %v880_v51 = vsub.f32 1.0, %v879_v48  ;;  %vm884_vm11 = vweird.f32 %v2733_v22  ;;  %v2064_v31 = vmul.f32 -1.442695, %v714_v15  ;;  %v728_v32 = vadd.f32 %v727_v50, %v2693_v25 }
 0x2de   :  { %v2329_v34 = vpop.eup %2328  ;;  %2334 = vrcp.f32 %v2777_v39  ;;  %v894_v4 = vmul.f32 %v2766_v29, %v2716_v7  ;;  %v831_v40 = vsel %vm2772_vm5, %v830_v37, %v826_v61  ;;  %v841_v41 = vsel %vm2822_vm12, %v2711_v59, %v837_v17  ;;  %vm2862_vm3 = vmor %vm883_vm10, %vm884_vm11 }
 0x2df   :  { %v2783_v43 = vadd.f32 1.0, %v2329_v34  ;;  %v2331_v44 = vpop.eup %2330  ;;  %v881_v2 = vmul.f32 %v2733_v22, %v880_v51  ;;  %v746_v34 = vpop.f32.mrf.mxu3  ;;  %vm943_vm14 = vweird.f32 %v2745_v56  ;;  %vm2833_vm15 = vcmp.eq.f32.partialorder %v947_v33, 8.507059e+37 }
 0x2e0   :  { %v2816_v48 = vadd.f32 1.0, %v2331_v44  ;;  %v895_v30 = vsub.f32 1.0, %v894_v4  ;;  %v950_v51 = vor.u32 1.1754944e-38, %v949_v1  ;;  %vm898_vm0 = vweird.f32 %v2716_v7 }
 0x2e1   :  { %2336 = vrcp.f32 %v2783_v43  ;;  %v730_v4 = vpop.f32.mrf.mxu2  ;;  %v882_v52 = vadd.f32 %v2733_v22, %v881_v2  ;;  %v962_v59 = vand.u32 2147483647, %v2777_v39  ;;  %v2057_v16 = vmul.f32 -1.442695, %v728_v32 }
 0x2e2   :  { %v2333_v60 = vpop.eup %2332  ;;  %2338 = vpow2.f32 %v2063_v8  ;;  %v747_v61 = vadd.f32 %v746_v34, %v2693_v25  ;;  %v1066_v45 = vmul.f32 %v2740_v24, %v831_v40  ;;  %v846_v25 = vsel %vm2809_vm9, %v2781_v42, %v841_v41 }
 0x2e3   :  { %v939_v63 = vmul.f32 %v2333_v60, %v2745_v56  ;;  %vm944_vm13 = vweird.f32 %v2333_v60  ;;  %2340 = vrcp.f32 %v2816_v48  ;;  %v896_v56 = vmul.f32 %v2766_v29, %v895_v30 }
 0x2e4   :  { %v2335_v38 = vpop.eup %2334  ;;  %vm945_vm1 = vmor %vm943_vm14, %vm944_vm13  ;;  %2342 = vpow2.f32 %v2064_v31  ;;  %vm899_vm4 = vweird.f32 %v2766_v29  ;;  %vm958_vm5 = vweird.f32 %v2777_v39  ;;  %v886_v41 = vsel %vm2862_vm3, %v2733_v22, %v882_v52 }
 0x2e5   :  { %v940_v46 = vsub.f32 1.0, %v939_v63  ;;  %v954_v50 = vmul.f32 %v2335_v38, %v2777_v39  ;;  %vm959_vm2 = vweird.f32 %v2335_v38  ;;  %v964_v63 = vand.u32 2147483648, %v2777_v39  ;;  %vm2890_vm9 = vmor %vm898_vm0, %vm899_vm4 }
 0x2e6   :  { %2344 = vpow2.f32 %v2057_v16  ;;  %v897_v34 = vadd.f32 %v2766_v29, %v896_v56  ;;  %vm960_vm6 = vmor %vm958_vm5, %vm959_vm2  ;;  %vm963_vm7 = vcmp.eq.f32.partialorder %v962_v59, 8.507059e+37  ;;  %vm888_vm8 = vcmp.eq.f32.partialorder %v887_v57, 8.507059e+37 }
 0x2e7   :  { %v941_v44 = vmul.f32 %v2333_v60, %v940_v46  ;;  %v2838_v8 = vpop.eup %2336  ;;  %v955_v15 = vsub.f32 1.0, %v954_v50  ;;  %v965_v42 = vor.u32 1.1754944e-38, %v964_v63  ;;  %v749_v39 = vpop.f32.mrf.mxu3  ;;  %vm2896_vm10 = vcmp.eq.f32.partialorder %v902_v19, 8.507059e+37 }
 0x2e8   :  { %v2339_v33 = vpop.eup %2338  ;;  %v849_v46 = vmul.f32 %v2838_v8, %v2783_v43  ;;  %v891_v49 = vsel %vm888_vm8, %v2788_v3, %v886_v41  ;;  %v901_v57 = vsel %vm2890_vm9, %v2766_v29, %v897_v34  ;;  %v905_v19 = vor.u32 1.1754944e-38, %v904_v0 }
 0x2e9   :  { %v942_v37 = vadd.f32 %v2333_v60, %v941_v44  ;;  %v956_v2 = vmul.f32 %v2335_v38, %v955_v15  ;;  %v2853_v31 = vadd.f32 1.0, %v2339_v33  ;;  %v1067_v15 = vmul.f32 %v2750_v62, %v846_v25  ;;  %v732_v62 = vpop.f32.mrf.mxu2 }
 0x2ea   :  { %v850_v35 = vsub.f32 1.0, %v849_v46  ;;  %v750_v29 = vadd.f32 %v749_v39, %v2703_v36  ;;  %v2919_v33 = vmul.f32 %v2743_v55, %v891_v49  ;;  %v2923_v7 = vsel %vm2896_vm10, %v905_v19, %v901_v57 }
 0x2eb   :  { %v946_v17 = vsel %vm945_vm1, %v2333_v60, %v942_v37  ;;  %v2058_v60 = vmul.f32 -1.442695, %v747_v61  ;;  %v957_v24 = vadd.f32 %v2335_v38, %v956_v2  ;;  %2346 = vrcp.f32 %v2853_v31 }
 0x2ec   :  { %v951_v1 = vsel %vm2833_vm15, %v950_v51, %v946_v17  ;;  %v731_v37 = vadd.f32 %v730_v4, %v2703_v36  ;;  %v851_v16 = vmul.f32 %v2838_v8, %v850_v35  ;;  %v733_v61 = vadd.f32 %v732_v62, %v2755_v47 }
 0x2ed   :  { %v1082_v30 = vmul.f32 %v2723_v18, %v951_v1  ;;  %v2868_v18 = vpop.eup %2340  ;;  %v961_v44 = vsel %vm960_vm6, %v2335_v38, %v957_v24  ;;  %2348 = vpow2.f32 %v2058_v60  ;;  %v859_v0 = vand.u32 2147483648, %v2783_v43 }
 0x2ee   :  { %v2343_v26 = vpop.eup %2342  ;;  %v966_v51 = vsel %vm963_vm7, %v965_v42, %v961_v44  ;;  %v864_v52 = vmul.f32 %v2868_v18, %v2816_v48  ;;  %v2061_v63 = vmul.f32 -1.442695, %v731_v37  ;;  %vm853_vm11 = vweird.f32 %v2783_v43 }
 0x2ef   :  { %v2871_v40 = vadd.f32 %v1082_v30, %v1066_v45  ;;  %v2878_v50 = vadd.f32 1.0, %v2343_v26  ;;  %v2345_v56 = vpop.eup %2344  ;;  %v1083_v4 = vmul.f32 %v2727_v20, %v966_v51  ;;  %v857_v20 = vand.u32 2147483647, %v2783_v43  ;;  %v751_v41 = vpop.f32.mrf.mxu3 }
 0x2f0   :  { %v2914_v3 = vadd.f32 1.0, %v2345_v56  ;;  %v865_v55 = vsub.f32 1.0, %v864_v52  ;;  %v1007_v2 = vand.u32 2147483647, %v2853_v31  ;;  %v1009_v46 = vand.u32 2147483648, %v2853_v31 }
 0x2f1   :  { %1414 = vrot.lane.b32.xlu1 %v2871_v40, %s2373_s19  ;;  %2350 = vrcp.f32 %v2878_v50  ;;  %v2910_v59 = vadd.f32 %v1083_v4, %v1067_v15  ;;  %v2347_v17 = vpop.eup %2346  ;;  %vm854_vm12 = vweird.f32 %v2838_v8  ;;  %vm869_vm13 = vweird.f32 %v2868_v18 }
 0x2f2   :  { %v999_v1 = vmul.f32 %v2347_v17, %v2853_v31  ;;  %2352 = vrcp.f32 %v2914_v3  ;;  %v874_v45 = vand.u32 2147483648, %v2816_v48  ;;  %v2939_v25 = vadd.f32 %v2838_v8, %v851_v16  ;;  %vm2973_vm3 = vmor %vm853_vm11, %vm854_vm12 }
 0x2f3   :  { %1206 = vrot.lane.b32.xlu2 %v2910_v59, %s2374_s20  ;;  %1418 = vrot.lane.b32.xlu0 %v2910_v59, %s2373_s19  ;;  %v2349_v36 = vpop.eup %2348  ;;  %2354 = vpow2.f32 %v2061_v63  ;;  %v2062_v32 = vmul.f32 -1.442695, %v750_v29  ;;  %v2065_v24 = vmul.f32 -1.442695, %v733_v61  ;;  %vm1004_vm14 = vweird.f32 %v2347_v17 }
 0x2f4   :  { %v1000_v30 = vsub.f32 1.0, %v999_v1  ;;  %v2944_v26 = vadd.f32 1.0, %v2349_v36  ;;  %v866_v44 = vmul.f32 %v2868_v18, %v865_v55  ;;  %vm1003_vm15 = vweird.f32 %v2853_v31 }
 0x2f5   :  { %vm2948_vm0 = vcmp.eq.f32.partialorder %v1007_v2, 8.507059e+37  ;;  %v1010_v39 = vor.u32 1.1754944e-38, %v1009_v46  ;;  %v1022_v56 = vand.u32 2147483647, %v2878_v50  ;;  %2356 = vpow2.f32 %v2062_v32  ;;  %vm1005_vm1 = vmor %vm1003_vm15, %vm1004_vm14 }
 0x2f6   :  { %v1001_v34 = vmul.f32 %v2347_v17, %v1000_v30  ;;  %v1024_v22 = vand.u32 2147483648, %v2878_v50  ;;  %2358 = vpow2.f32 %v2065_v24  ;;  %v752_v38 = vadd.f32 %v751_v41, %v2755_v47 }
 0x2f7   :  { %v2351_v60 = vpop.eup %2350  ;;  %v1304_v31 = vpack.c.bf16 %v2910_v59, %v2871_v40  ;;  %2360 = vrcp.f32 %v2944_v26  ;;  %v867_v57 = vadd.f32 %v2868_v18, %v866_v44  ;;  %vm1018_vm4 = vweird.f32 %v2878_v50 }
 0x2f8   :  { %v1014_v42 = vmul.f32 %v2351_v60, %v2878_v50  ;;  %v1002_v51 = vadd.f32 %v2347_v17, %v1001_v34  ;;  %v2953_v15 = vpop.eup %2352  ;;  %vm1019_vm2 = vweird.f32 %v2351_v60  ;;  %v2066_v19 = vmul.f32 -1.442695, %v752_v38 }
 0x2f9   :  { %1363 = vrot.lane.b32.xlu1 %v2871_v40, %s2375_s21  ;;  %v2355_v49 = vpop.eup %2354  ;;  %v909_v52 = vmul.f32 %v2953_v15, %v2914_v3  ;;  %1308 = vst [vmem:[#allocation2 + $0x80] sm:$0xff] %v1304_v31  ;;  %v856_v61 = vsel %vm2973_vm3, %v2838_v8, %v2939_v25  ;;  %vm868_vm5 = vweird.f32 %v2816_v48  ;;  %v872_v1 = vand.u32 2147483647, %v2816_v48  ;;  %vm1020_vm6 = vmor %vm1018_vm4, %vm1019_vm2 }
 0x2fa   :  { %v1015_v37 = vsub.f32 1.0, %v1014_v42  ;;  %v1006_v4 = vsel %vm1005_vm1, %v2347_v17, %v1002_v51  ;;  %v2979_v29 = vadd.f32 1.0, %v2355_v49  ;;  %v1025_v36 = vor.u32 1.1754944e-38, %v1024_v22  ;;  %vm2992_vm7 = vmor %vm868_vm5, %vm869_vm13 }
 0x2fb   :  { %1367 = vrot.lane.b32.xlu0 %v2910_v59, %s2375_s21  ;;  %1151 = vrot.lane.b32.xlu2 %v2871_v40, %s2376_s22  ;;  %v1011_v47 = vsel %vm2948_vm0, %v1010_v39, %v1006_v4  ;;  %vm1023_vm8 = vcmp.eq.f32.partialorder %v1022_v56, 8.507059e+37  ;;  %2362 = vpow2.f32 %v2066_v19  ;;  %v871_v46 = vsel %vm2992_vm7, %v2868_v18, %v867_v57 }
 0x2fc   :  { %v1016_v62 = vmul.f32 %v2351_v60, %v1015_v37  ;;  %v1086_v17 = vmul.f32 %v2731_v21, %v1011_v47  ;;  %v2357_v21 = vpop.eup %2356  ;;  %v910_v25 = vsub.f32 1.0, %v909_v52  ;;  %2364 = vrcp.f32 %v2979_v29 }
 0x2fd   :  { %v2359_v2 = vpop.eup %2358  ;;  %v1071_v24 = vmul.f32 %v2758_v27, %v2923_v7  ;;  %vm858_vm9 = vcmp.eq.f32.partialorder %v857_v20, 8.507059e+37  ;;  %vm873_vm10 = vcmp.eq.f32.partialorder %v872_v1, 8.507059e+37  ;;  %v3014_v18 = vadd.f32 1.0, %v2357_v21 }
 0x2fe   :  { %v1017_v63 = vadd.f32 %v2351_v60, %v1016_v62  ;;  %v2997_v8 = vadd.f32 %v1086_v17, %v2919_v33  ;;  %v3003_v32 = vpop.eup %2360  ;;  %v860_v33 = vor.u32 1.1754944e-38, %v859_v0  ;;  %v3016_v42 = vadd.f32 1.0, %v2359_v2 }
 0x2ff   :  { %v1061_v41 = vmul.f32 2.0, %v2643_v54  ;;  %v919_v43 = vand.u32 2147483648, %v2914_v3  ;;  %v924_v48 = vmul.f32 %v3003_v32, %v2944_v26  ;;  %2366 = vrcp.f32 %v3014_v18 }
 0x300   :  { %v1021_v55 = vsel %vm1020_vm6, %v2351_v60, %v1017_v63  ;;  %v875_v60 = vor.u32 1.1754944e-38, %v874_v45  ;;  %v861_v44 = vsel %vm858_vm9, %v860_v33, %v856_v61  ;;  %v1076_v20 = vmul.f32 2.0, %v137_v11 }
 0x301   :  { %1312 = vrot.lane.b32.xlu1 %v2871_v40, %s2377_s23  ;;  %v1026_v30 = vsel %vm1023_vm8, %v1025_v36, %v1021_v55  ;;  %v2363_v54 = vpop.eup %2362  ;;  %v917_v0 = vand.u32 2147483647, %v2914_v3  ;;  %v3035_v35 = vmul.f32 2.0, %v138_v12  ;;  %v3039_v39 = vmul.f32 2.0, %v141_v13 }
 0x302   :  { %v1087_v34 = vmul.f32 %v2737_v23, %v1026_v30  ;;  %v876_v27 = vsel %vm873_vm10, %v875_v60, %v871_v46  ;;  %v911_v23 = vmul.f32 %v2953_v15, %v910_v25  ;;  %v2365_v45 = vpop.eup %2364  ;;  %v3042_v51 = vmul.f32 2.0, %v2638_v53 }
 0x303   :  { %1316 = vrot.lane.b32.xlu0 %v2910_v59, %s2377_s23  ;;  %1416 = vrot.lane.b32.xlu2 %v2997_v8, %s2373_s19  ;;  %2368 = vrcp.f32 %v3016_v42  ;;  %v1068_v5 = vmul.f32 %v2761_v28, %v861_v44  ;;  %v3048_v11 = vmul.f32 %v1061_v41, %v876_v27  ;;  %vm913_vm11 = vweird.f32 %v2914_v3 }
 0x304   :  { %v3019_v7 = vadd.f32 %v1087_v34, %v1071_v24  ;;  %v969_v6 = vmul.f32 %v2365_v45, %v2979_v29  ;;  %v912_v9 = vadd.f32 %v2953_v15, %v911_v23  ;;  %vm914_vm12 = vweird.f32 %v2953_v15 }
 0x305   :  { %v920_v12 = vor.u32 1.1754944e-38, %v919_v43  ;;  %v925_v13 = vsub.f32 1.0, %v924_v48  ;;  %vm3054_vm13 = vcmp.eq.f32.partialorder %v917_v0, 8.507059e+37  ;;  %v977_v56 = vand.u32 2147483647, %v2979_v29  ;;  %v2367_v38 = vpop.eup %2366  ;;  %vm3069_vm15 = vmor %vm913_vm11, %vm914_vm12 }
 0x306   :  { %v970_v37 = vsub.f32 1.0, %v969_v6  ;;  %v3059_v28 = vadd.f32 1.0, %v2363_v54  ;;  %v1306_v22 = vpack.c.bf16 %v3019_v7, %v2997_v8  ;;  %vm928_vm14 = vweird.f32 %v2944_v26 }
 0x307   :  { %v932_v31 = vand.u32 2147483647, %v2944_v26  ;;  %v934_v4 = vand.u32 2147483648, %v2944_v26  ;;  %v979_v62 = vand.u32 2147483648, %v2979_v29  ;;  %vm974_vm0 = vweird.f32 %v2365_v45 }
 0x308   :  { %v971_v57 = vmul.f32 %v2365_v45, %v970_v37  ;;  %v984_v47 = vmul.f32 %v2367_v38, %v3014_v18  ;;  %2370 = vrcp.f32 %v3059_v28  ;;  %1310 = vst [vmem:[#allocation2 + $0x90] sm:$0xff] %v1306_v22  ;;  %v916_v3 = vsel %vm3069_vm15, %v2953_v15, %v912_v9 }
 0x309   :  { %1253 = vrot.lane.b32.xlu1 %v2871_v40, %s2378_s24  ;;  %v2369_v52 = vpop.eup %2368  ;;  %v926_v19 = vmul.f32 %v3003_v32, %v925_v13  ;;  %vm929_vm1 = vweird.f32 %v3003_v32  ;;  %vm973_vm2 = vweird.f32 %v2979_v29  ;;  %vm978_vm3 = vcmp.eq.f32.partialorder %v977_v56, 8.507059e+37 }
 0x30a   :  { %v972_v16 = vadd.f32 %v2365_v45, %v971_v57  ;;  %v985_v17 = vsub.f32 1.0, %v984_v47  ;;  %v1029_v63 = vmul.f32 %v2369_v52, %v3016_v42  ;;  %vm975_vm4 = vmor %vm973_vm2, %vm974_vm0  ;;  %v980_v61 = vor.u32 1.1754944e-38, %v979_v62 }
 0x30b   :  { %1257 = vrot.lane.b32.xlu0 %v2910_v59, %s2378_s24  ;;  %1365 = vrot.lane.b32.xlu2 %v2997_v8, %s2375_s21  ;;  %vm988_vm5 = vweird.f32 %v3014_v18  ;;  %v992_v1 = vand.u32 2147483647, %v3014_v18  ;;  %v994_v15 = vand.u32 2147483648, %v3014_v18  ;;  %vm989_vm6 = vweird.f32 %v2367_v38  ;;  %vm3105_vm10 = vmor %vm928_vm14, %vm929_vm1 }
 0x30c   :  { %v976_v36 = vsel %vm975_vm4, %v2365_v45, %v972_v16  ;;  %v986_v21 = vmul.f32 %v2367_v38, %v985_v17  ;;  %v1030_v29 = vsub.f32 1.0, %v1029_v63  ;;  %v927_v50 = vadd.f32 %v3003_v32, %v926_v19  ;;  %vm990_vm8 = vmor %vm988_vm5, %vm989_vm6 }
 0x30d   :  { %v981_v55 = vsel %vm978_vm3, %v980_v61, %v976_v36  ;;  %v1037_v2 = vand.u32 2147483647, %v3016_v42  ;;  %v1039_v46 = vand.u32 2147483648, %v3016_v42  ;;  %vm1034_vm7 = vweird.f32 %v2369_v52  ;;  %v3254_v61 = vld [vmem:[%s3788_s4 + $0x8] sm:$0xf] }
 0x30e   :  { %v2371_v30 = vpop.eup %2370  ;;  %v1084_v25 = vmul.f32 %v1076_v20, %v981_v55  ;;  %v987_v24 = vadd.f32 %v2367_v38, %v986_v21  ;;  %v1031_v33 = vmul.f32 %v2369_v52, %v1030_v29  ;;  %v921_v60 = vsel %vm3054_vm13, %v920_v12, %v916_v3 }
 0x30f   :  { %v995_v34 = vor.u32 1.1754944e-38, %v994_v15  ;;  %vm1033_vm9 = vweird.f32 %v3016_v42  ;;  %v1044_v41 = vmul.f32 %v2371_v30, %v3059_v28  ;;  %vm993_vm11 = vcmp.eq.f32.partialorder %v992_v1, 8.507059e+37 }
 0x310   :  { %v3109_v27 = vadd.f32 %v1084_v25, %v1068_v5  ;;  %v991_v23 = vsel %vm990_vm8, %v2367_v38, %v987_v24  ;;  %v1032_v43 = vadd.f32 %v2369_v52, %v1031_v33  ;;  %v931_v18 = vsel %vm3105_vm10, %v3003_v32, %v927_v50  ;;  %vm1035_vm12 = vmor %vm1033_vm9, %vm1034_vm7  ;;  %v3295_v25 = vld [vmem:[%s3788_s4 + $0x1c] sm:$0xf] }
 0x311   :  { %1155 = vrot.lane.b32.xlu1 %v2910_v59, %s2376_s22  ;;  %v996_v42 = vsel %vm993_vm11, %v995_v34, %v991_v23  ;;  %v1040_v48 = vor.u32 1.1754944e-38, %v1039_v46  ;;  %v1045_v54 = vsub.f32 1.0, %v1044_v41  ;;  %vm1038_vm13 = vcmp.eq.f32.partialorder %v1037_v2, 8.507059e+37 }
 0x312   :  { %v1085_v20 = vmul.f32 %v3035_v35, %v996_v42  ;;  %v1036_v0 = vsel %vm1035_vm12, %v2369_v52, %v1032_v43  ;;  %v1054_v45 = vand.u32 2147483648, %v3059_v28  ;;  %vm1049_vm14 = vweird.f32 %v2371_v30  ;;  %v1554_v42 = vld [vmem:[%s3784_s3 + $0x40] sm:$0xff] }
 0x313   :  { %1314 = vrot.lane.b32.xlu2 %v2997_v8, %s2377_s23  ;;  %1202 = vrot.lane.b32.xlu0 %v2871_v40, %s2374_s20  ;;  %v1041_v5 = vsel %vm1038_vm13, %v1040_v48, %v1036_v0  ;;  %v1046_v6 = vmul.f32 %v2371_v30, %v1045_v54  ;;  %v1052_v9 = vand.u32 2147483647, %v3059_v28  ;;  %v1072_v32 = vmul.f32 %v3042_v51, %v921_v60  ;;  %v1555_v48 = vld [vmem:[%s3784_s3 + $0x48] sm:$0xff] }
 0x314   :  { %v935_v12 = vor.u32 1.1754944e-38, %v934_v4  ;;  %v3128_v35 = vadd.f32 %v1085_v20, %v3048_v11  ;;  %v1088_v13 = vmul.f32 %v3039_v39, %v1041_v5  ;;  %v1065_v53 = vmul.f32 2.0, %v2650_v58 }
 0x315   :  { %vm933_vm15 = vcmp.eq.f32.partialorder %v932_v31, 8.507059e+37  ;;  %v1047_v37 = vadd.f32 %v2371_v30, %v1046_v6  ;;  %vm1048_vm0 = vweird.f32 %v3059_v28  ;;  %v1055_v51 = vor.u32 1.1754944e-38, %v1054_v45 }
 0x316   :  { %v936_v56 = vsel %vm933_vm15, %v935_v12, %v931_v18  ;;  %v3135_v22 = vadd.f32 %v1088_v13, %v1072_v32  ;;  %vm1050_vm1 = vmor %vm1048_vm0, %vm1049_vm14  ;;  %v1305_v38 = vpack.c.bf16 %v3128_v35, %v3109_v27  ;;  %v1081_v11 = vmul.f32 2.0, %v142_v14  ;;  %v3325_v18 = vld [vmem:[%s3788_s4 + $0x18] sm:$0xf]  ;;  %v3354_v13 = vld [vmem:[%s3788_s4 + $0x14] sm:$0xf] }
 0x317   :  { %v1051_v39 = vsel %vm1050_vm1, %v2371_v30, %v1047_v37  ;;  %vm1053_vm2 = vcmp.eq.f32.partialorder %v1052_v9, 8.507059e+37  ;;  %v1073_v26 = vmul.f32 %v1065_v53, %v936_v56  ;;  %v1114_v16 = vlaneseq }
 0x318   :  { %v1056_v58 = vsel %vm1053_vm2, %v1055_v51, %v1051_v39  ;;  %1309 = vst [vmem:[#allocation2 + $0x88] sm:$0xff] %v1305_v38  ;;  %v1230_v36 = vperm.slane %v3254_v61, 1  ;;  %v1441_v33 = vperm.slane %v3295_v25, 0  ;;  %v1442_v60 = vperm.slane %v3295_v25, 1 }
 0x319   :  { %1098 = vrot.lane.b32.xlu1 %v2871_v40, %s2379_s25  ;;  %v1089_v28 = vmul.f32 %v1081_v11, %v1056_v58  ;;  %v3258_v15 = vand.u32 127, %v1114_v16  ;;  %v1390_v0 = vperm.slane %v3325_v18, 0  ;;  %v1391_v45 = vperm.slane %v3325_v18, 1 }
 0x31a   :  { %v1339_v56 = vperm.slane %v3354_v13, 0  ;;  %v3795_v16 = vperm.slane %v3325_v18, 3  ;;  %vm1755_vm11 = vcmask 130048  }
 0x31b   :  { %1255 = vrot.lane.b32.xlu2 %v2997_v8, %s2378_s24  ;;  %1102 = vrot.lane.b32.xlu0 %v2910_v59, %s2379_s25  ;;  %v3145_v31 = vadd.f32 %v1089_v28, %v1073_v26  ;;  %vm1218_vm3 = vcmp.lt.s32.totalorder %v3258_v15, 15  ;;  %vm1430_vm4 = vcmp.lt.s32.totalorder %v3258_v15, 112  ;;  %vm1379_vm5 = vcmp.lt.s32.totalorder %v3258_v15, 113  ;;  %v3377_v28 = vld [vmem:[%s3788_s4 + $0xc] sm:$0xf] }
 0x31c   :  { %vm1328_vm6 = vcmp.lt.s32.totalorder %v3258_v15, 127  ;;  %vm1269_vm7 = vcmp.lt.s32.totalorder %v3258_v15, 1  ;;  %vm1167_vm8 = vcmp.lt.s32.totalorder %v3258_v15, 16  ;;  %vm1116_vm9 = vcmp.lt.s32.totalorder %v3258_v15, 17 }
 0x31d   :  { %v1307_v10 = vpack.c.bf16 %v3145_v31, %v3135_v22  ;;  %vm1481_vm10 = vcmp.lt.s32.totalorder %v3258_v15, 111 }
 0x31f   :  { %1311 = vst [vmem:[#allocation2 + $0x98] sm:$0xff] %v1307_v10  ;;  %v2277_v15 = vld [vmem:[#allocation2 + $0x8c] sm:$0xf] }
 0x321   :  { %1465 = vrot.lane.b32.xlu1 %v2871_v40, %s2380_s26 }
 0x323   :  { %1157 = vrot.lane.b32.xlu2 %v3019_v7, %s2376_s22  ;;  %1469 = vrot.lane.b32.xlu0 %v2910_v59, %s2380_s26 }
 0x329   :  { %1420 = vrot.lane.b32.xlu1 %v3019_v7, %s2373_s19 }
 0x32b   :  { %1100 = vrot.lane.b32.xlu2 %v2997_v8, %s2379_s25  ;;  %1208 = vrot.lane.b32.xlu0 %v3019_v7, %s2374_s20 }
 0x331   :  { %1369 = vrot.lane.b32.xlu1 %v3019_v7, %s2375_s21 }
 0x333   :  { %1467 = vrot.lane.b32.xlu2 %v2997_v8, %s2380_s26  ;;  %1153 = vrot.lane.b32.xlu0 %v2997_v8, %s2376_s22 }
 0x339   :  { %1318 = vrot.lane.b32.xlu1 %v3019_v7, %s2377_s23 }
 0x33b   :  { %1422 = vrot.lane.b32.xlu2 %v3109_v27, %s2373_s19  ;;  %1375 = vrot.lane.b32.xlu0 %v3128_v35, %s2375_s21 }
 0x341   :  { %1259 = vrot.lane.b32.xlu1 %v3019_v7, %s2378_s24 }
 0x343   :  { %1371 = vrot.lane.b32.xlu2 %v3109_v27, %s2375_s21  ;;  %1163 = vrot.lane.b32.xlu0 %v3128_v35, %s2376_s22 }
 0x349   :  { %1204 = vrot.lane.b32.xlu1 %v2997_v8, %s2374_s20 }
 0x34b   :  { %1320 = vrot.lane.b32.xlu2 %v3109_v27, %s2377_s23  ;;  %1210 = vrot.lane.b32.xlu0 %v3109_v27, %s2374_s20 }
 0x34d   :  { %v3185_v14 = vpop.permute.xlu2 %1206 }
 0x351   :  { %1104 = vrot.lane.b32.xlu1 %v3019_v7, %s2379_s25 }
 0x353   :  { %1265 = vrot.lane.b32.xlu2 %v3128_v35, %s2378_s24  ;;  %1424 = vrot.lane.b32.xlu0 %v3135_v22, %s2373_s19 }
 0x355   :  { %v3193_v40 = vpop.permute.xlu2 %1151 }
 0x359   :  { %1471 = vrot.lane.b32.xlu1 %v3019_v7, %s2380_s26 }
 0x35b   :  { %1324 = vrot.lane.b32.xlu2 %v3128_v35, %s2377_s23  ;;  %1373 = vrot.lane.b32.xlu0 %v3135_v22, %s2375_s21 }
 0x35d   :  { %v3201_v59 = vpop.permute.xlu2 %1416 }
 0x361   :  { %1426 = vrot.lane.b32.xlu1 %v3128_v35, %s2373_s19 }
 0x363   :  { %v3205_v8 = vpop.permute.xlu1 %1414  ;;  %1110 = vrot.lane.b32.xlu2 %v3128_v35, %s2379_s25  ;;  %1322 = vrot.lane.b32.xlu0 %v3135_v22, %s2377_s23 }
 0x365   :  { %v1419_v7 = vpop.permute.xlu0 %1418  ;;  %v3211_v4 = vpop.permute.xlu2 %1365 }
 0x366   :  { %v1435_v34 = vsel %vm1430_vm4, %v3205_v8, %v1419_v7 }
 0x367   :  { %v1449_v23 = vmul.f32 %v1441_v33, %v1435_v34 }
 0x369   :  { %1214 = vrot.lane.b32.xlu1 %v3128_v35, %s2374_s20 }
 0x36b   :  { %v3215_v62 = vpop.permute.xlu1 %1363  ;;  %1473 = vrot.lane.b32.xlu2 %v3109_v27, %s2380_s26  ;;  %1267 = vrot.lane.b32.xlu0 %v3145_v31, %s2378_s24 }
 0x36d   :  { %v3221_v49 = vpop.permute.xlu0 %1367  ;;  %v3223_v57 = vpop.permute.xlu2 %1314 }
 0x36e   :  { %v1384_v5 = vsel %vm1379_vm5, %v3215_v62, %v3221_v49 }
 0x36f   :  { %v1398_v12 = vmul.f32 %v1390_v0, %v1384_v5 }
 0x371   :  { %1261 = vrot.lane.b32.xlu1 %v3109_v27, %s2378_s24 }
 0x373   :  { %v3227_v47 = vpop.permute.xlu1 %1312  ;;  %1428 = vrot.lane.b32.xlu2 %v3145_v31, %s2373_s19  ;;  %1326 = vrot.lane.b32.xlu0 %v3145_v31, %s2377_s23 }
 0x375   :  { %v3233_v52 = vpop.permute.xlu0 %1316  ;;  %v3235_v3 = vpop.permute.xlu2 %1255 }
 0x376   :  { %v1333_v51 = vsel %vm1328_vm6, %v3227_v47, %v3233_v52 }
 0x377   :  { %v1347_v58 = vmul.f32 %v1339_v56, %v1333_v51  ;;  %v1342_v51 = vperm.slane %v3354_v13, 3 }
 0x379   :  { %1377 = vrot.lane.b32.xlu1 %v3145_v31, %s2375_s21 }
 0x37b   :  { %v3239_v19 = vpop.permute.xlu1 %1253  ;;  %1216 = vrot.lane.b32.xlu2 %v3145_v31, %s2374_s20  ;;  %1112 = vrot.lane.b32.xlu0 %v3145_v31, %s2379_s25 }
 0x37d   :  { %v3245_v17 = vpop.permute.xlu0 %1257  ;;  %v3247_v63 = vpop.permute.xlu2 %1157 }
 0x381   :  { %1165 = vrot.lane.b32.xlu1 %v3145_v31, %s2376_s22 }
 0x383   :  { %v3256_v1 = vpop.permute.xlu1 %1155  ;;  %1263 = vrot.lane.b32.xlu2 %v3135_v22, %s2378_s24  ;;  %1475 = vrot.lane.b32.xlu0 %v3135_v22, %s2380_s26 }
 0x385   :  { %v3266_v21 = vpop.permute.xlu2 %1100  ;;  %v3268_v29 = vpop.permute.xlu0 %1202 }
 0x386   :  { %v1223_v50 = vsel %vm1218_vm3, %v3268_v29, %v3185_v14 }
 0x387   :  { %v3278_v55 = vmul.f32 %v1230_v36, %v1223_v50  ;;  %v1274_v50 = vsel %vm1269_vm7, %v3239_v19, %v3245_v17 }
 0x389   :  { %1212 = vrot.lane.b32.xlu1 %v3135_v22, %s2374_s20 }
 0x38b   :  { %v3280_v2 = vpop.permute.xlu1 %1098  ;;  %1159 = vrot.lane.b32.xlu2 %v3109_v27, %s2376_s22  ;;  %1161 = vrot.lane.b32.xlu0 %v3135_v22, %s2376_s22 }
 0x38d   :  { %v3286_v46 = vpop.permute.xlu2 %1467  ;;  %v3288_v30 = vpop.permute.xlu0 %1102 }
 0x391   :  { %1106 = vrot.lane.b32.xlu1 %v3109_v27, %s2379_s25 }
 0x393   :  { %v3297_v24 = vpop.permute.xlu1 %1465  ;;  %1108 = vrot.lane.b32.xlu2 %v3135_v22, %s2379_s25  ;;  %1477 = vrot.lane.b32.xlu0 %v3128_v35, %s2380_s26  ;;  %v1340_v22 = vperm.slane %v3354_v13, 1 }
 0x395   :  { %v3309_v41 = vpop.permute.xlu2 %1422  ;;  %v3311_v44 = vpop.permute.xlu0 %1469 }
 0x396   :  { %v1433_v27 = vsel %vm1430_vm4, %v1419_v7, %v3309_v41  ;;  %v1281_v7 = vperm.slane %v3377_v28, 1 }
 0x397   :  { %v1450_v43 = vmul.f32 %v1442_v60, %v1433_v27 }
 0x399   :  { %1479 = vrot.lane.b32.xlu1 %v3145_v31, %s2380_s26  ;;  %v1457_v20 = vpack.c.bf16 %v1450_v43, %v1449_v23 }
 0x39b   :  { %v3333_v54 = vpop.permute.xlu1 %1420  ;;  %1461 = vst [vmem:[#allocation2 + $0xe0] sm:$0xff] %v1457_v20  ;;  %1558 = vperm.xlu2 %2307, %v1554_v42   ;;  %1563 = vperm.xlu0 %2305, %v1555_v48   ;;  %v1289_v48 = vmul.f32 %v1281_v7, %v1274_v50 }
 0x39d   :  { %v1372_v6 = vpop.permute.xlu2 %1371  ;;  %v3342_v9 = vpop.permute.xlu0 %1208 }
 0x39e   :  { %v1382_v32 = vsel %vm1379_vm5, %v3221_v49, %v1372_v6  ;;  %v1280_v49 = vperm.slane %v3377_v28, 0 }
 0x39f   :  { %v1399_v35 = vmul.f32 %v1391_v45, %v1382_v32 }
 0x3a1   :  { %v1406_v37 = vpack.c.bf16 %v1399_v35, %v1398_v12 }
 0x3a3   :  { %v3356_v53 = vpop.permute.xlu1 %1369  ;;  %1410 = vst [vmem:[#allocation2 + $0xc0] sm:$0xff] %v1406_v37  ;;  %v1341_v37 = vperm.slane %v3354_v13, 2  ;;  %v3826_v13 = vperm.slane %v3325_v18, 2 }
 0x3a5   :  { %v1321_v38 = vpop.permute.xlu2 %1320  ;;  %v3365_v11 = vpop.permute.xlu0 %1153 }
 0x3a6   :  { %v1331_v39 = vsel %vm1328_vm6, %v3233_v52, %v1321_v38  ;;  %v3796_v52 = vperm.slane %v3325_v18, 2 }
 0x3a7   :  { %v1348_v26 = vmul.f32 %v1340_v22, %v1331_v39 }
 0x3a9   :  { %v1355_v10 = vpack.c.bf16 %v1348_v26, %v1347_v58  ;;  %v1172_v58 = vsel %vm1167_vm8, %v3193_v40, %v3256_v1 }
 0x3ab   :  { %v3379_v31 = vpop.permute.xlu1 %1318  ;;  %1359 = vst [vmem:[#allocation2 + $0xa0] sm:$0xff] %v1355_v10 }
 0x3ad   :  { %v3390_v34 = vpop.permute.xlu2 %1265  ;;  %v1376_v27 = vpop.permute.xlu0 %1375 }
 0x3ae   :  { %v1276_v23 = vsel %vm1269_vm7, %v3390_v34, %v3239_v19  ;;  %v1380_v43 = vsel %vm1379_vm5, %v1372_v6, %v1376_v27  ;;  %v1386_v42 = vsel %vm1379_vm5, %v1376_v27, %v3215_v62  ;;  %v3412_v19 = vld [vmem:[%s3788_s4 + $0x4] sm:$0xf] }
 0x3af   :  { %v1288_v20 = vmul.f32 %v1280_v49, %v1276_v23  ;;  %v1400_v5 = vmul.f32 %v3796_v52, %v1380_v43  ;;  %v1401_v32 = vmul.f32 %v3795_v16, %v1386_v42  ;;  %v3792_v35 = vperm.slane %v3412_v19, 1 }
 0x3b0   :  { %v3791_v39 = vperm.slane %v3412_v19, 0  ;;  %v1443_v52 = vperm.slane %v3295_v25, 2 }
 0x3b1   :  { %v1296_v62 = vpack.c.bf16 %v1289_v48, %v1288_v20  ;;  %v1407_v12 = vpack.c.bf16 %v1401_v32, %v1400_v5  ;;  %v1187_v43 = vmul.f32 %v3792_v35, %v1172_v58 }
 0x3b3   :  { %v3414_v6 = vpop.permute.xlu1 %1259  ;;  %1300 = vst [vmem:[#allocation2 + $0x60] sm:$0xff] %v1296_v62 }
 0x3b4   :  { %1411 = vst [vmem:[#allocation2 + $0xc8] sm:$0xff] %v1407_v12 }
 0x3b5   :  { %v1325_v26 = vpop.permute.xlu2 %1324  ;;  %v3425_v10 = vpop.permute.xlu0 %1163 }
 0x3b6   :  { %v1329_v50 = vsel %vm1328_vm6, %v1321_v38, %v1325_v26  ;;  %v1335_v27 = vsel %vm1328_vm6, %v1325_v26, %v3227_v47  ;;  %v1174_v23 = vsel %vm1167_vm8, %v3425_v10, %v3193_v40  ;;  %v3447_v47 = vld [vmem:[%s3788_s4] sm:$0xf]  ;;  %v3790_v26 = vperm.slane %v3254_v61, 2 }
 0x3b7   :  { %v1349_v42 = vmul.f32 %v1341_v37, %v1329_v50  ;;  %v1350_v48 = vmul.f32 %v1342_v51, %v1335_v27  ;;  %v1186_v38 = vmul.f32 %v3791_v39, %v1174_v23  ;;  %v3794_v12 = vperm.slane %v3447_v47, 1 }
 0x3b8   :  { %v3793_v58 = vperm.slane %v3447_v47, 0  ;;  %v1121_v50 = vsel %vm1116_vm9, %v3280_v2, %v3288_v30 }
 0x3b9   :  { %v1356_v40 = vpack.c.bf16 %v1350_v48, %v1349_v42  ;;  %v1194_v5 = vpack.c.bf16 %v1187_v43, %v1186_v38  ;;  %v1136_v42 = vmul.f32 %v3794_v12, %v1121_v50  ;;  %v1486_v50 = vsel %vm1481_vm10, %v3297_v24, %v3311_v44 }
 0x3bb   :  { %v3449_v20 = vpop.permute.xlu1 %1204  ;;  %1360 = vst [vmem:[#allocation2 + $0xa8] sm:$0xff] %v1356_v40  ;;  %v3490_v40 = vld [vmem:[%s3788_s4 + $0x20] sm:$0xf] }
 0x3bc   :  { %v1224_v32 = vsel %vm1218_vm3, %v3449_v20, %v3342_v9  ;;  %1198 = vst [vmem:[#allocation2 + $0x20] sm:$0xff] %v1194_v5  ;;  %v1492_v5 = vperm.slane %v3490_v40, 0 }
 0x3bd   :  { %v3458_v62 = vmul.f32 %v1230_v36, %v1224_v32  ;;  %v3467_v27 = vpop.permute.xlu2 %1110  ;;  %v3469_v23 = vpop.permute.xlu0 %1210  ;;  %v3797_v32 = vperm.slane %v3490_v40, 1 }
 0x3be   :  { %v1123_v36 = vsel %vm1116_vm9, %v3467_v27, %v3280_v2  ;;  %v1221_v43 = vsel %vm1218_vm3, %v3185_v14, %v3469_v23 }
 0x3bf   :  { %v1135_v48 = vmul.f32 %v3793_v58, %v1123_v36  ;;  %v3485_v38 = vmul.f32 %v3790_v26, %v1221_v43  ;;  %v1436_v36 = vsel %vm1430_vm4, %v3201_v59, %v3333_v54 }
 0x3c0   :  { %v1453_v39 = vmul.f32 %v1441_v33, %v1436_v36  ;;  %v1385_v33 = vsel %vm1379_vm5, %v3211_v4, %v3356_v53 }
 0x3c1   :  { %v1143_v14 = vpack.c.bf16 %v1136_v42, %v1135_v48 }
 0x3c3   :  { %v3492_v2 = vpop.permute.xlu1 %1104  ;;  %1147 = vst [vmem:[#allocation2] sm:$0xff] %v1143_v14  ;;  %v1500_v14 = vmul.f32 %v1492_v5, %v1486_v50 }
 0x3c5   :  { %v3505_v43 = vpop.permute.xlu2 %1473  ;;  %v1425_v26 = vpop.permute.xlu0 %1424 }
 0x3c6   :  { %v1484_v42 = vsel %vm1481_vm10, %v3311_v44, %v3505_v43  ;;  %v1434_v48 = vsel %vm1430_vm4, %v3333_v54, %v1425_v26  ;;  %v1444_v54 = vperm.slane %v3295_v25, 3 }
 0x3c7   :  { %v1501_v35 = vmul.f32 %v3797_v32, %v1484_v42  ;;  %v1454_v58 = vmul.f32 %v1442_v60, %v1434_v48 }
 0x3c9   :  { %v1508_v16 = vpack.c.bf16 %v1501_v35, %v1500_v14  ;;  %v1459_v44 = vpack.c.bf16 %v1454_v58, %v1453_v39  ;;  %v1402_v35 = vmul.f32 %v1390_v0, %v1385_v33  ;;  %v1229_v33 = vperm.slane %v3254_v61, 0 }
 0x3cb   :  { %v3522_v12 = vpop.permute.xlu1 %1471  ;;  %1512 = vst [vmem:[#allocation2 + $0x100] sm:$0xff] %v1508_v16 }
 0x3cc   :  { %1463 = vst [vmem:[#allocation2 + $0xf0] sm:$0xff] %v1459_v44 }
 0x3cd   :  { %v1429_v50 = vpop.permute.xlu2 %1428  ;;  %v3530_v36 = vpop.permute.xlu0 %1373 }
 0x3ce   :  { %v1432_v60 = vsel %vm1430_vm4, %v1425_v26, %v1429_v50  ;;  %v1438_v16 = vsel %vm1430_vm4, %v1429_v50, %v3201_v59  ;;  %v1383_v25 = vsel %vm1379_vm5, %v3356_v53, %v3530_v36  ;;  %v2189_v53 = vld [vmem:[#allocation2 + $0xe0] sm:$0xf]  ;;  %v2288_v50 = vld [vmem:[#allocation2 + $0xe4] sm:$0xf] }
 0x3cf   :  { %v1455_v39 = vmul.f32 %v1443_v52, %v1432_v60  ;;  %v1456_v58 = vmul.f32 %v1444_v54, %v1438_v16  ;;  %v1403_v42 = vmul.f32 %v1391_v45, %v1383_v25  ;;  %v1334_v16 = vsel %vm1328_vm6, %v3223_v57, %v3379_v31 }
 0x3d1   :  { %v1460_v14 = vpack.c.bf16 %v1456_v58, %v1455_v39  ;;  %v1408_v26 = vpack.c.bf16 %v1403_v42, %v1402_v35  ;;  %v1232_v58 = vperm.slane %v3254_v61, 3 }
 0x3d3   :  { %v1427_v48 = vpop.permute.xlu1 %1426  ;;  %1464 = vst [vmem:[#allocation2 + $0xf8] sm:$0xff] %v1460_v14  ;;  %v2290_v60 = vld [vmem:[#allocation2 + $0xec] sm:$0xf0]  ;;  %v2191_v45 = vld [vmem:[#allocation2 + $0xf0] sm:$0xf0] }
 0x3d4   :  { %v1431_v59 = vsel %vm1430_vm4, %v3309_v41, %v1427_v48  ;;  %v1437_v44 = vsel %vm1430_vm4, %v1427_v48, %v3205_v8  ;;  %1412 = vst [vmem:[#allocation2 + $0xd0] sm:$0xff] %v1408_v26  ;;  %v2190_v41 = vor.u32 %v2290_v60, %v2189_v53  ;;  %v2194_v25 = vor.u32 %v2288_v50, %v2191_v45  ;;  %v2173_v53 = vld [vmem:[#allocation2 + $0xc0] sm:$0xf] }
 0x3d5   :  { %v1451_v32 = vmul.f32 %v1443_v52, %v1431_v59  ;;  %v1452_v0 = vmul.f32 %v1444_v54, %v1437_v44  ;;  %v3556_v39 = vpop.permute.xlu2 %1216  ;;  %v3558_v8 = vpop.permute.xlu0 %1322  ;;  %v1282_v44 = vperm.slane %v3377_v28, 2 }
 0x3d6   :  { %v1226_v52 = vsel %vm1218_vm3, %v3556_v39, %v3449_v20  ;;  %v1332_v54 = vsel %vm1328_vm6, %v3379_v31, %v3558_v8  ;;  %1759 = vmatpush.bf16.msrb.mxu0 %v2190_v41  ;;  %1787 = vmatpush.bf16.msrb.mxu2 %v2194_v25 }
 0x3d7   :  { %v1458_v35 = vpack.c.bf16 %v1452_v0, %v1451_v32  ;;  %v1351_v32 = vmul.f32 %v1339_v56, %v1334_v16  ;;  %v1241_v42 = vmul.f32 %v1229_v33, %v1226_v52  ;;  %v1352_v48 = vmul.f32 %v1340_v22, %v1332_v54  ;;  %v2284_v56 = vld [vmem:[#allocation2 + $0xc4] sm:$0xf] }
 0x3d9   :  { %1462 = vst [vmem:[#allocation2 + $0xe8] sm:$0xff] %v1458_v35  ;;  %v1247_v20 = vpack.c.bf16 %v3458_v62, %v1241_v42  ;;  %v1357_v26 = vpack.c.bf16 %v1352_v48, %v1351_v32  ;;  %v1275_v62 = vsel %vm1269_vm7, %v3235_v3, %v3414_v6 }
 0x3db   :  { %v1215_v14 = vpop.permute.xlu1 %1214  ;;  %1251 = vst [vmem:[#allocation2 + $0x50] sm:$0xff] %v1247_v20  ;;  %v2286_v0 = vld [vmem:[#allocation2 + $0xcc] sm:$0xf0]  ;;  %v2175_v60 = vld [vmem:[#allocation2 + $0xd0] sm:$0xf0] }
 0x3dc   :  { %v1219_v31 = vsel %vm1218_vm3, %v3469_v23, %v1215_v14  ;;  %v1225_v59 = vsel %vm1218_vm3, %v1215_v14, %v3268_v29  ;;  %v1283_v23 = vperm.slane %v3377_v28, 3  ;;  %1361 = vst [vmem:[#allocation2 + $0xb0] sm:$0xff] %v1357_v26  ;;  %v2174_v29 = vor.u32 %v2286_v0, %v2173_v53 }
 0x3dd   :  { %v1237_v50 = vmul.f32 %v1229_v33, %v1225_v59  ;;  %v1240_v22 = vmul.f32 %v1232_v58, %v1219_v31  ;;  %v2178_v45 = vor.u32 %v2284_v56, %v2175_v60  ;;  %v1264_v41 = vpop.permute.xlu2 %1263  ;;  %v1268_v25 = vpop.permute.xlu0 %1267  ;;  %v1180_v26 = vperm.slane %v3412_v19, 2  ;;  %v2280_v31 = vld [vmem:[#allocation2 + $0xa4] sm:$0xf]  ;;  %v2278_v60 = vld [vmem:[#allocation2 + $0x8c] sm:$0xf0] }
 0x3de   :  { %v1273_v35 = vsel %vm1269_vm7, %v3414_v6, %v1264_v41  ;;  %v1271_v52 = vsel %vm1269_vm7, %v1264_v41, %v1268_v25  ;;  %v1277_v54 = vsel %vm1269_vm7, %v1268_v25, %v3235_v3  ;;  %1760 = vmatpush.bf16.msrb.mxu0 %v2174_v29  ;;  %v2143_v29 = vld [vmem:[#allocation2 + $0x90] sm:$0xf0]  ;;  %v2141_v41 = vld [vmem:[#allocation2 + $0x80] sm:$0xf] }
 0x3df   :  { %v1245_v16 = vpack.c.bf16 %v3278_v55, %v1237_v50  ;;  %v1246_v33 = vpack.c.bf16 %v1240_v22, %v3485_v38  ;;  %1788 = vmatpush.bf16.msrb.mxu2 %v2178_v45  ;;  %v1293_v55 = vmul.f32 %v1281_v7, %v1275_v62  ;;  %v1294_v38 = vmul.f32 %v1282_v44, %v1273_v35  ;;  %v2157_v7 = vld [vmem:[#allocation2 + $0xa0] sm:$0xf] }
 0x3e0   :  { %v1292_v32 = vmul.f32 %v1280_v49, %v1277_v54  ;;  %v1295_v42 = vmul.f32 %v1283_v23, %v1271_v52  ;;  %v1181_v49 = vperm.slane %v3412_v19, 3  ;;  %v2142_v25 = vor.u32 %v2278_v60, %v2141_v41 }
 0x3e1   :  { %1249 = vst [vmem:[#allocation2 + $0x40] sm:$0xff] %v1245_v16  ;;  %v3830_v41 = vperm.slane %v3412_v19, 1 }
 0x3e2   :  { %1250 = vst [vmem:[#allocation2 + $0x48] sm:$0xff] %v1246_v33  ;;  %v1298_v48 = vpack.c.bf16 %v1293_v55, %v1292_v32  ;;  %v1299_v14 = vpack.c.bf16 %v1295_v42, %v1294_v38  ;;  %v2125_v38 = vld [vmem:[#allocation2 + $0x60] sm:$0xf]  ;;  %v3827_v32 = vperm.slane %v3325_v18, 3  ;;  %v1173_v18 = vsel %vm1167_vm8, %v3365_v11, %v3247_v63 }
 0x3e3   :  { %v1262_v6 = vpop.permute.xlu1 %1261  ;;  %v2282_v53 = vld [vmem:[#allocation2 + $0xac] sm:$0xf0]  ;;  %v2159_v56 = vld [vmem:[#allocation2 + $0xb0] sm:$0xf0] }
 0x3e4   :  { %v1270_v20 = vsel %vm1269_vm7, %v1262_v6, %v3390_v34  ;;  %v1272_v3 = vsel %vm1269_vm7, %v3245_v17, %v1262_v6  ;;  %1302 = vst [vmem:[#allocation2 + $0x70] sm:$0xff] %v1298_v48  ;;  %v2158_v50 = vor.u32 %v2282_v53, %v2157_v7  ;;  %v2162_v22 = vor.u32 %v2280_v31, %v2159_v56  ;;  %v2272_v48 = vld [vmem:[#allocation2 + $0x64] sm:$0xf] }
 0x3e5   :  { %v1290_v59 = vmul.f32 %v1282_v44, %v1272_v3  ;;  %v1291_v28 = vmul.f32 %v1283_v23, %v1270_v20  ;;  %1303 = vst [vmem:[#allocation2 + $0x78] sm:$0xff] %v1299_v14  ;;  %v1160_v34 = vpop.permute.xlu2 %1159  ;;  %v1327_v0 = vpop.permute.xlu0 %1326  ;;  %v1129_v20 = vperm.slane %v3447_v47, 2 }
 0x3e6   :  { %v1168_v17 = vsel %vm1167_vm8, %v1160_v34, %v3425_v10  ;;  %v1170_v44 = vsel %vm1167_vm8, %v3256_v1, %v1160_v34  ;;  %v1330_v23 = vsel %vm1328_vm6, %v3558_v8, %v1327_v0  ;;  %v1336_v45 = vsel %vm1328_vm6, %v1327_v0, %v3223_v57  ;;  %1761 = vmatpush.bf16.msrb.mxu0 %v2158_v50  ;;  %v2276_v8 = vld [vmem:[#allocation2 + $0x84] sm:$0xf] }
 0x3e7   :  { %v1297_v62 = vpack.c.bf16 %v1291_v28, %v1290_v59  ;;  %v1188_v16 = vmul.f32 %v1180_v26, %v1170_v44  ;;  %v1189_v33 = vmul.f32 %v1181_v49, %v1168_v17  ;;  %v1353_v10 = vmul.f32 %v1341_v37, %v1330_v23  ;;  %1789 = vmatpush.bf16.msrb.mxu2 %v2162_v22  ;;  %v2270_v44 = vld [vmem:[#allocation2 + $0x4c] sm:$0xf0] }
 0x3e8   :  { %v1354_v1 = vmul.f32 %v1342_v51, %v1336_v45  ;;  %v2146_v35 = vor.u32 %v2276_v8, %v2143_v29  ;;  %v2109_v53 = vld [vmem:[#allocation2 + $0x40] sm:$0xf]  ;;  %v3828_v34 = vperm.slane %v3447_v47, 1  ;;  %v3829_v29 = vperm.slane %v3447_v47, 0  ;;  %v2111_v45 = vld [vmem:[#allocation2 + $0x50] sm:$0xf0] }
 0x3e9   :  { %1301 = vst [vmem:[#allocation2 + $0x68] sm:$0xff] %v1297_v62  ;;  %v1195_v52 = vpack.c.bf16 %v1189_v33, %v1188_v16  ;;  %v2268_v62 = vld [vmem:[#allocation2 + $0x44] sm:$0xf]  ;;  %v2110_v23 = vor.u32 %v2270_v44, %v2109_v53  ;;  %v1191_v8 = vmul.f32 %v3830_v41, %v1173_v18  ;;  %v2197_v18 = vld [vmem:[#allocation2 + $0xe8] sm:$0xf] }
 0x3ea   :  { %v1358_v54 = vpack.c.bf16 %v1354_v1, %v1353_v10  ;;  %1762 = vmatpush.bf16.msrb.mxu0 %v2142_v25  ;;  %v2114_v10 = vor.u32 %v2268_v62, %v2111_v45  ;;  %v3831_v25 = vperm.slane %v3412_v19, 0  ;;  %v2077_v53 = vld [vmem:[#allocation2] sm:$0xf]  ;;  %v2291_v62 = vld [vmem:[#allocation2 + $0xf4] sm:$0xf0] }
 0x3eb   :  { %v1378_v57 = vpop.permute.xlu1 %1377  ;;  %v2274_v6 = vld [vmem:[#allocation2 + $0x6c] sm:$0xf0]  ;;  %v2127_v14 = vld [vmem:[#allocation2 + $0x70] sm:$0xf0]  ;;  %1199 = vst [vmem:[#allocation2 + $0x28] sm:$0xff] %v1195_v52  ;;  %1790 = vmatpush.bf16.msrb.mxu2 %v2146_v35 }
 0x3ec   :  { %v1381_v55 = vsel %vm1379_vm5, %v3530_v36, %v1378_v57  ;;  %v1387_v37 = vsel %vm1379_vm5, %v1378_v57, %v3211_v4  ;;  %v1130_v36 = vperm.slane %v3447_v47, 3  ;;  %v2126_v3 = vor.u32 %v2274_v6, %v2125_v38  ;;  %1362 = vst [vmem:[#allocation2 + $0xb8] sm:$0xff] %v1358_v54  ;;  %v2259_v19 = vld [vmem:[%s3783_s2 + $0x44] sm:$0xf0]  ;;  %v2258_v44 = vld [vmem:[%s3783_s2 + $0x44] sm:$0xf] }
 0x3ed   :  { %v1404_v51 = vmul.f32 %v3826_v13, %v1381_v55  ;;  %v1405_v42 = vmul.f32 %v3827_v32, %v1387_v37  ;;  %v2130_v7 = vor.u32 %v2272_v48, %v2127_v14  ;;  %v1122_v4 = vsel %vm1116_vm9, %v3266_v21, %v3492_v2  ;;  %v1109_v59 = vpop.permute.xlu2 %1108  ;;  %v1113_v28 = vpop.permute.xlu0 %1112  ;;  %v2093_v14 = vld [vmem:[#allocation2 + $0x20] sm:$0xf] }
 0x3ee   :  { %v1120_v56 = vsel %vm1116_vm9, %v3492_v2, %v1109_v59  ;;  %v1118_v50 = vsel %vm1116_vm9, %v1109_v59, %v1113_v28  ;;  %v1124_v22 = vsel %vm1116_vm9, %v1113_v28, %v3266_v21  ;;  %1763 = vmatpush.bf16.msrb.mxu0 %v2126_v3  ;;  %v1140_v0 = vmul.f32 %v3828_v34, %v1122_v4  ;;  %v2264_v3 = vld [vmem:[#allocation2 + $0x24] sm:$0xf]  ;;  %v2205_v34 = vld [vmem:[#allocation2 + $0x100] sm:$0xf] }
 0x3ef   :  { %v1409_v31 = vpack.c.bf16 %v1405_v42, %v1404_v51  ;;  %v1141_v60 = vmul.f32 %v1129_v20, %v1120_v56  ;;  %v1139_v17 = vmul.f32 %v3829_v29, %v1124_v22  ;;  %v1142_v2 = vmul.f32 %v1130_v36, %v1118_v50  ;;  %1791 = vmatpush.bf16.msrb.mxu2 %v2130_v7  ;;  %v2260_v50 = vld [vmem:[#allocation2 + $0x4] sm:$0xf]  ;;  %v2069_v29 = vld [vmem:[%s3783_s2 + $0x40] sm:$0xf] }
 0x3f0   :  { %v1487_v57 = vsel %vm1481_vm10, %v3286_v46, %v3522_v12  ;;  %v3832_v37 = vperm.slane %v3490_v40, 1  ;;  %v3833_v6 = vperm.slane %v3254_v61, 2 }
 0x3f1   :  { %1413 = vst [vmem:[#allocation2 + $0xd8] sm:$0xff] %v1409_v31  ;;  %v1145_v16 = vpack.c.bf16 %v1140_v0, %v1139_v17  ;;  %v1146_v33 = vpack.c.bf16 %v1142_v2, %v1141_v60  ;;  %v1504_v55 = vmul.f32 %v1492_v5, %v1487_v57  ;;  %v2198_v60 = vor.u32 %v2291_v62, %v2197_v18 }
 0x3f2   :  { %1764 = vmatpush.bf16.msrb.mxu0 %v2110_v23  ;;  %v2071_v23 = vld [vmem:[%s3783_s2 + $0x48] sm:$0xf0] }
 0x3f3   :  { %v1166_v21 = vpop.permute.xlu1 %1165  ;;  %1149 = vst [vmem:[#allocation2 + $0x10] sm:$0xff] %v1145_v16  ;;  %1792 = vmatpush.bf16.msrb.mxu2 %v2114_v10 }
 0x3f4   :  { %v1175_v1 = vsel %vm1167_vm8, %v1166_v21, %v3365_v11  ;;  %1150 = vst [vmem:[#allocation2 + $0x18] sm:$0xff] %v1146_v33 }
 0x3f5   :  { %v1190_v35 = vmul.f32 %v3831_v25, %v1175_v1  ;;  %v3677_v54 = vpop.permute.xlu0 %1475  ;;  %v2199_v25 = vld [vmem:[#allocation2 + $0xf8] sm:$0xf0] }
 0x3f6   :  { %v1485_v11 = vsel %vm1481_vm10, %v3522_v12, %v3677_v54 }
 0x3f7   :  { %v1196_v52 = vpack.c.bf16 %v1191_v8, %v1190_v35  ;;  %v1505_v38 = vmul.f32 %v3832_v37, %v1485_v11  ;;  %v3730_v35 = vor.u32 %v2259_v19, %v2069_v29  ;;  %v3732_v11 = vor.u32 %v2258_v44, %v2071_v23 }
 0x3f8   :  { %v2287_v47 = vld [vmem:[#allocation2 + $0xd4] sm:$0xf0] }
 0x3f9   :  { %1200 = vst [vmem:[#allocation2 + $0x30] sm:$0xff] %v1196_v52  ;;  %v1510_v51 = vpack.c.bf16 %v1505_v38, %v1504_v55 }
 0x3fa   :  { %v2262_v56 = vld [vmem:[#allocation2 + $0xc] sm:$0xf0]  ;;  %v2079_v22 = vld [vmem:[#allocation2 + $0x10] sm:$0xf0] }
 0x3fb   :  { %v1213_v13 = vpop.permute.xlu1 %1212  ;;  %1514 = vst [vmem:[#allocation2 + $0x110] sm:$0xff] %v1510_v51  ;;  %v2078_v10 = vor.u32 %v2262_v56, %v2077_v53  ;;  %v2082_v1 = vor.u32 %v2260_v50, %v2079_v22  ;;  %v2285_v51 = vld [vmem:[#allocation2 + $0xcc] sm:$0xf]  ;;  %v2275_v53 = vld [vmem:[#allocation2 + $0x74] sm:$0xf0] }
 0x3fc   :  { %v1220_v32 = vsel %vm1218_vm3, %v1213_v13, %v3556_v39  ;;  %v1222_v42 = vsel %vm1218_vm3, %v3342_v9, %v1213_v13  ;;  %v2181_v13 = vld [vmem:[#allocation2 + $0xc8] sm:$0xf]  ;;  %v2135_v56 = vld [vmem:[#allocation2 + $0x78] sm:$0xf0] }
 0x3fd   :  { %v1243_v12 = vmul.f32 %v3833_v6, %v1222_v42  ;;  %v1244_v48 = vmul.f32 %v1232_v58, %v1220_v32  ;;  %v1162_v7 = vpop.permute.xlu0 %1161 }
 0x3fe   :  { %v1169_v39 = vsel %vm1167_vm8, %v1162_v7, %v1166_v21  ;;  %v1171_v9 = vsel %vm1167_vm8, %v3247_v63, %v1162_v7  ;;  %v2289_v63 = vld [vmem:[#allocation2 + $0xec] sm:$0xf]  ;;  %v2292_v21 = vld [vmem:[#allocation2 + $0x104] sm:$0xf]  ;;  %v2165_v7 = vld [vmem:[#allocation2 + $0xa8] sm:$0xf] }
 0x3ff   :  { %v1248_v5 = vpack.c.bf16 %v1244_v48, %v1243_v12  ;;  %v1192_v61 = vmul.f32 %v1180_v26, %v1171_v9  ;;  %v1193_v58 = vmul.f32 %v1181_v49, %v1169_v39  ;;  %v1494_v49 = vperm.slane %v3490_v40, 2  ;;  %v2283_v48 = vld [vmem:[#allocation2 + $0xb4] sm:$0xf0] }
 0x400   :  { %v2266_v4 = vld [vmem:[#allocation2 + $0x2c] sm:$0xf0]  ;;  %v2095_v31 = vld [vmem:[#allocation2 + $0x30] sm:$0xf0]  ;;  %v2202_v52 = vor.u32 %v2289_v63, %v2199_v25  ;;  %v2166_v18 = vor.u32 %v2283_v48, %v2165_v7  ;;  %v2279_v9 = vld [vmem:[#allocation2 + $0x94] sm:$0xf0] }
 0x401   :  { %1252 = vst [vmem:[#allocation2 + $0x58] sm:$0xff] %v1248_v5  ;;  %v2094_v59 = vor.u32 %v2266_v4, %v2093_v14  ;;  %v2098_v28 = vor.u32 %v2264_v3, %v2095_v31  ;;  %v1197_v26 = vpack.c.bf16 %v1193_v58, %v1192_v61  ;;  %v2167_v5 = vld [vmem:[#allocation2 + $0xb8] sm:$0xf0]  ;;  %v2281_v4 = vld [vmem:[#allocation2 + $0xac] sm:$0xf] }
 0x402   :  { %v2294_v45 = vld [vmem:[#allocation2 + $0x10c] sm:$0xf0]  ;;  %v2207_v16 = vld [vmem:[#allocation2 + $0x110] sm:$0xf0]  ;;  %v2170_v39 = vor.u32 %v2281_v4, %v2167_v5  ;;  %v2133_v61 = vld [vmem:[#allocation2 + $0x68] sm:$0xf] }
 0x403   :  { %v1107_v0 = vpop.permute.xlu1 %1106  ;;  %1765 = vmatpush.bf16.msrb.mxu0 %v2094_v59  ;;  %1793 = vmatpush.bf16.msrb.mxu2 %v2098_v28  ;;  %1201 = vst [vmem:[#allocation2 + $0x38] sm:$0xff] %v1197_v26  ;;  %v2206_v41 = vor.u32 %v2294_v45, %v2205_v34  ;;  %v2210_v8 = vor.u32 %v2292_v21, %v2207_v16  ;;  %v2151_v59 = vld [vmem:[#allocation2 + $0x98] sm:$0xf0]  ;;  %v2273_v58 = vld [vmem:[#allocation2 + $0x6c] sm:$0xf] }
 0x404   :  { %v1117_v17 = vsel %vm1116_vm9, %v1107_v0, %v3467_v27  ;;  %v1119_v2 = vsel %vm1116_vm9, %v3288_v30, %v1107_v0  ;;  %v1495_v30 = vperm.slane %v3490_v40, 3  ;;  %v2154_v28 = vor.u32 %v2277_v15, %v2151_v59  ;;  %v2101_v21 = vld [vmem:[#allocation2 + $0x28] sm:$0xf]  ;;  %v2265_v16 = vld [vmem:[#allocation2 + $0x2c] sm:$0xf] }
 0x405   :  { %v1137_v33 = vmul.f32 %v1129_v20, %v1119_v2  ;;  %v1138_v27 = vmul.f32 %v1130_v36, %v1117_v17  ;;  %v1478_v20 = vpop.permute.xlu0 %1477  ;;  %1780 = vmatpush.bf16.msrb.mxu1 %v2206_v41  ;;  %1808 = vmatpush.bf16.msrb.mxu3 %v2210_v8  ;;  %v2183_v36 = vld [vmem:[#allocation2 + $0xd8] sm:$0xf0]  ;;  %v2134_v50 = vor.u32 %v2275_v53, %v2133_v61  ;;  %v2269_v17 = vld [vmem:[#allocation2 + $0x4c] sm:$0xf] }
 0x406   :  { %v1482_v40 = vsel %vm1481_vm10, %v3505_v43, %v1478_v20  ;;  %v1488_v55 = vsel %vm1481_vm10, %v1478_v20, %v3297_v24  ;;  %v2182_v43 = vor.u32 %v2287_v47, %v2181_v13  ;;  %v2186_v24 = vor.u32 %v2285_v51, %v2183_v36  ;;  %v2087_v41 = vld [vmem:[#allocation2 + $0x18] sm:$0xf0] }
 0x407   :  { %v1144_v57 = vpack.c.bf16 %v1138_v27, %v1137_v33  ;;  %1766 = vmatpush.bf16.msrb.mxu0 %v2078_v10  ;;  %1794 = vmatpush.bf16.msrb.mxu2 %v2082_v1  ;;  %v1502_v37 = vmul.f32 %v1494_v49, %v1482_v40  ;;  %v1503_v38 = vmul.f32 %v1495_v30, %v1488_v55 }
 0x408   :  { %2219 = vmatmul.msk.bf16.vlgmr.msrb.gmra.mxu1 %vm1755_vm11, %v3732_v11  ;;  %2220 = vmatmul.msk.bf16.vlgmr.msrb.gmra.mxu3 %vm1755_vm11, %v3732_v11  ;;  %v2138_v22 = vor.u32 %v2273_v58, %v2135_v56  ;;  %v2271_v34 = vld [vmem:[#allocation2 + $0x54] sm:$0xf0]  ;;  %v2119_v0 = vld [vmem:[#allocation2 + $0x58] sm:$0xf0] }
 0x409   :  { %1148 = vst [vmem:[#allocation2 + $0x8] sm:$0xff] %v1144_v57  ;;  %v1509_v42 = vpack.c.bf16 %v1503_v38, %v1502_v37  ;;  %v2122_v44 = vor.u32 %v2269_v17, %v2119_v0  ;;  %v1559_v57 = vpop.permute.xlu2 %1558 }
 0x40a   :  { %1767 = vmatmul.bf16.vlgmr.msrb.gmra.mxu0 %v3730_v35  ;;  %1795 = vmatmul.bf16.vlgmr.msrb.gmra.mxu2 %v3730_v35  ;;  %v2267_v23 = vld [vmem:[#allocation2 + $0x34] sm:$0xf0]  ;;  %v2103_v45 = vld [vmem:[#allocation2 + $0x38] sm:$0xf0] }
 0x40b   :  { %1815 = vmatpush.bf16.msra.mxu0 %v2198_v60  ;;  %1843 = vmatpush.bf16.msra.mxu2 %v2202_v52  ;;  %v1480_v32 = vpop.permute.xlu1 %1479  ;;  %1513 = vst [vmem:[#allocation2 + $0x108] sm:$0xff] %v1509_v42  ;;  %v2102_v33 = vor.u32 %v2267_v23, %v2101_v21  ;;  %v2106_v27 = vor.u32 %v2265_v16, %v2103_v45 }
 0x40c   :  { %v1483_v6 = vsel %vm1481_vm10, %v3677_v54, %v1480_v32  ;;  %v1489_v12 = vsel %vm1481_vm10, %v1480_v32, %v3286_v46  ;;  %v2149_v54 = vld [vmem:[#allocation2 + $0x88] sm:$0xf] }
 0x40d   :  { %v1506_v14 = vmul.f32 %v1494_v49, %v1483_v6  ;;  %v1507_v3 = vmul.f32 %v1495_v30, %v1489_v12  ;;  %v2150_v46 = vor.u32 %v2279_v9, %v2149_v54  ;;  %v2117_v49 = vld [vmem:[#allocation2 + $0x48] sm:$0xf]  ;;  %v2263_v30 = vld [vmem:[#allocation2 + $0x14] sm:$0xf0]  ;;  %v1564_v38 = vpop.permute.xlu0 %1563 }
 0x40e   :  { %v2118_v2 = vor.u32 %v2271_v34, %v2117_v49 }
 0x40f   :  { %1816 = vmatpush.bf16.msra.mxu0 %v2182_v43  ;;  %1844 = vmatpush.bf16.msra.mxu2 %v2186_v24  ;;  %v1511_v31 = vpack.c.bf16 %v1507_v3, %v1506_v14 }
 0x410   :  { %v2085_v10 = vld [vmem:[#allocation2 + $0x8] sm:$0xf]  ;;  %v2261_v1 = vld [vmem:[#allocation2 + $0xc] sm:$0xf] }
 0x411   :  { %1515 = vst [vmem:[#allocation2 + $0x118] sm:$0xff] %v1511_v31  ;;  %v2086_v8 = vor.u32 %v2263_v30, %v2085_v10  ;;  %v2090_v25 = vor.u32 %v2261_v1, %v2087_v41 }
 0x412   :  { %v2213_v62 = vld [vmem:[#allocation2 + $0x108] sm:$0xf]  ;;  %v2293_v63 = vld [vmem:[#allocation2 + $0x10c] sm:$0xf] }
 0x413   :  { %1817 = vmatpush.bf16.msra.mxu0 %v2166_v18  ;;  %1845 = vmatpush.bf16.msra.mxu2 %v2170_v39 }
 0x417   :  { %1818 = vmatpush.bf16.msra.mxu0 %v2150_v46  ;;  %1846 = vmatpush.bf16.msra.mxu2 %v2154_v28 }
 0x418   :  { %v2295_v60 = vld [vmem:[#allocation2 + $0x114] sm:$0xf0]  ;;  %v2215_v29 = vld [vmem:[#allocation2 + $0x118] sm:$0xf0] }
 0x419   :  { %v2214_v19 = vor.u32 %v2295_v60, %v2213_v62  ;;  %v2218_v26 = vor.u32 %v2293_v63, %v2215_v29 }
 0x41b   :  { %1819 = vmatpush.bf16.msra.mxu0 %v2134_v50  ;;  %1847 = vmatpush.bf16.msra.mxu2 %v2138_v22 }
 0x41c   :  { %1836 = vmatpush.bf16.msra.mxu1 %v2214_v19  ;;  %1864 = vmatpush.bf16.msra.mxu3 %v2218_v26 }
 0x41f   :  { %1820 = vmatpush.bf16.msra.mxu0 %v2118_v2  ;;  %1848 = vmatpush.bf16.msra.mxu2 %v2122_v44 }
 0x420   :  { %2221 = vmatmul.msk.bf16.vlgmr.msra.gmra.mxu1 %vm1755_vm11, %v3732_v11  ;;  %2222 = vmatmul.msk.bf16.vlgmr.msra.gmra.mxu3 %vm1755_vm11, %v3732_v11 }
 0x423   :  { %1821 = vmatpush.bf16.msra.mxu0 %v2102_v33  ;;  %1849 = vmatpush.bf16.msra.mxu2 %v2106_v27 }
 0x427   :  { %1822 = vmatpush.bf16.msra.mxu0 %v2086_v8  ;;  %1850 = vmatpush.bf16.msra.mxu2 %v2090_v25 }
 0x42a   :  { %1823 = vmatmul.bf16.vlgmr.msra.gmra.mxu0 %v3730_v35  ;;  %1851 = vmatmul.bf16.vlgmr.msra.gmra.mxu2 %v3730_v35 }
 0x485   :  { %v1782_v11 = vpop.f32.mrf.mxu1 }
 0x487   :  { %v1768_v52 = vpop.f32.mrf.mxu0 }
 0x488   :  { %v1769_v20 = vadd.f32 %v1768_v52, %v1559_v57 }
 0x48a   :  { %v1783_v47 = vadd.f32 %v1782_v11, %v1769_v20 }
 0x48b   :  { %v1810_v37 = vpop.f32.mrf.mxu3 }
 0x48c   :  { %v1871_v36 = vmax.f32 %v1783_v47, 0.0 }
 0x48d   :  { %v1796_v40 = vpop.f32.mrf.mxu2  ;;  %v1784_v43 = vpop.f32.mrf.mxu1 }
 0x48e   :  { %1879 = vst [vmem:[%s3789_s7] sm:$0xff] %v1871_v36  ;;  %v1797_v55 = vadd.f32 %v1796_v40, %v1559_v57 }
 0x48f   :  { %v1770_v13 = vpop.f32.mrf.mxu0 }
 0x490   :  { %v1771_v51 = vadd.f32 %v1770_v13, %v1564_v38  ;;  %v1811_v32 = vadd.f32 %v1810_v37, %v1797_v55 }
 0x492   :  { %v1872_v24 = vmax.f32 %v1811_v32, 0.0  ;;  %v1785_v35 = vadd.f32 %v1784_v43, %v1771_v51 }
 0x493   :  { %v1812_v48 = vpop.f32.mrf.mxu3 }
 0x494   :  { %1880 = vst [vmem:[%s3789_s7 + $0x8] sm:$0xff] %v1872_v24  ;;  %v1875_v42 = vmax.f32 %v1785_v35, 0.0 }
 0x495   :  { %v1798_v6 = vpop.f32.mrf.mxu2 }
 0x496   :  { %1883 = vst [vmem:[%s3789_s7 + $0x20] sm:$0xff] %v1875_v42  ;;  %v1799_v12 = vadd.f32 %v1798_v6, %v1564_v38 }
 0x498   :  { %v1813_v5 = vadd.f32 %v1812_v48, %v1799_v12 }
 0x49a   :  { %v1876_v14 = vmax.f32 %v1813_v5, 0.0 }
 0x49c   :  { %1884 = vst [vmem:[%s3789_s7 + $0x28] sm:$0xff] %v1876_v14 }
 0x49d   :  { %v1838_v7 = vpop.f32.mrf.mxu1 }
 0x4a3   :  { %v1866_v9 = vpop.f32.mrf.mxu3 }
 0x4a5   :  { %v1840_v28 = vpop.f32.mrf.mxu1 }
 0x4a7   :  { %v1824_v3 = vpop.f32.mrf.mxu0 }
 0x4a8   :  { %v1825_v4 = vadd.f32 %v1824_v3, %v1559_v57 }
 0x4aa   :  { %v1839_v31 = vadd.f32 %v1838_v7, %v1825_v4 }
 0x4ab   :  { %v1868_v22 = vpop.f32.mrf.mxu3 }
 0x4ac   :  { %v1873_v18 = vmax.f32 %v1839_v31, 0.0 }
 0x4ad   :  { %v1852_v39 = vpop.f32.mrf.mxu2 }
 0x4ae   :  { %1881 = vst [vmem:[%s3789_s7 + $0x10] sm:$0xff] %v1873_v18  ;;  %v1853_v59 = vadd.f32 %v1852_v39, %v1559_v57 }
 0x4af   :  { %v1826_v54 = vpop.f32.mrf.mxu0 }
 0x4b0   :  { %v1827_v15 = vadd.f32 %v1826_v54, %v1564_v38  ;;  %v1867_v46 = vadd.f32 %v1866_v9, %v1853_v59 }
 0x4b2   :  { %v1874_v61 = vmax.f32 %v1867_v46, 0.0  ;;  %v1841_v58 = vadd.f32 %v1840_v28, %v1827_v15 }
 0x4b4   :  { %1882 = vst [vmem:[%s3789_s7 + $0x18] sm:$0xff] %v1874_v61  ;;  %v1877_v53 = vmax.f32 %v1841_v58, 0.0 }
 0x4b5   :  { %v1854_v56 = vpop.f32.mrf.mxu2 }
 0x4b6   :  { %1885 = vst [vmem:[%s3789_s7 + $0x30] sm:$0xff] %v1877_v53  ;;  %v1855_v50 = vadd.f32 %v1854_v56, %v1564_v38 }
 0x4b8   :  { %v1869_v62 = vadd.f32 %v1868_v22, %v1855_v50 }
 0x4ba   :  { %v1878_v34 = vmax.f32 %v1869_v62, 0.0 }
 0x4bc   :  { %1886 = vst [vmem:[%s3789_s7 + $0x38] sm:$0xff] %v1878_v34 }

</bundles_post_ra>
